<compile_context>
chip_gen: v6e
topology: v6e:2x2x1
jax: 0.10.0
libtpu: 0.0.40
codegen_flags: <defaults>
</compile_context>

<pallas_src>
import jax
import jax.numpy as jnp
from jax.experimental import pallas as pl
from jax.experimental.pallas import tpu as pltpu


# ----------------------------------------------------------------------------
# Fused kernel: synthetic backbones + full MyModelv7 head
# ----------------------------------------------------------------------------
def _fused_kernel(x_ref, w_bb_ref, b_bb_ref,          # stacked activations + fused backbone
                  w_br_hbm, w_r1_hbm, w_r23_hbm, b_head_hbm,   # head weights (HBM, pl.ANY)
                  o_ref,                                        # (Bp, 128) f32 output
                  w_br, w_r1, w_r23, b_head, sem):              # VMEM scratch + DMA sems
    bf16 = jnp.bfloat16
    relu = lambda z: jnp.maximum(z, 0.0)
    sigmoid = jax.nn.sigmoid

    # ---- kick off head-weight DMAs (overlap with backbone matmul) ----------
    copies = [
        pltpu.make_async_copy(w_br_hbm,   w_br,   sem.at[0]),
        pltpu.make_async_copy(w_r1_hbm,   w_r1,   sem.at[1]),
        pltpu.make_async_copy(w_r23_hbm,  w_r23,  sem.at[2]),
        pltpu.make_async_copy(b_head_hbm, b_head, sem.at[3]),
    ]
    for cp in copies:
        cp.start()

    Bp = o_ref.shape[0]                 # padded per-image batch (multiple of 8)
    F = b_bb_ref.shape[1] // 3          # backbone feature width (lane multiple)

    # ---- fused backbones (Dropout = identity, inference mode) --------------
    # x rows  : [0:Bp]=leye, [Bp:2Bp]=reye, [2Bp:3Bp]=face
    # y cols  : [0:F]=eye_channel feats, [F:2F]=attention feats, [2F:3F]=face feats
    y = relu(jnp.dot(x_ref[...], w_bb_ref[...],
                     preferred_element_type=jnp.float32) + b_bb_ref[...])   # (3Bp, 3F)

    l_bb   = y[0:Bp,        0:F]        # left-eye  eye_channel features
    r_bb   = y[Bp:2 * Bp,   0:F]        # right-eye eye_channel features
    l_ab   = y[0:Bp,        F:2 * F]    # left-eye  attention features
    r_ab   = y[Bp:2 * Bp,   F:2 * F]    # right-eye attention features
    y_face = y[2 * Bp:3 * Bp, 2 * F:3 * F]   # face backbone features

    # ---- head weights must be resident from here on ------------------------
    for cp in copies:
        cp.wait()

    def dot(a_f32, w_bf16):
        # bf16 x bf16 MXU matmul, f32 accumulation.
        return jnp.dot(a_f32.astype(bf16), w_bf16, preferred_element_type=jnp.float32)

    # ---- branch FCs (order: face, leye, reye, latt, ratt) -------------------
    f_feat = relu(dot(y_face, w_br[0]) + b_head[0:1, :])
    l_feat = relu(dot(l_bb,   w_br[1]) + b_head[1:2, :])
    r_feat = relu(dot(r_bb,   w_br[2]) + b_head[2:3, :])
    l_att  = sigmoid(dot(l_ab, w_br[3]) + b_head[3:4, :])
    r_att  = sigmoid(dot(r_ab, w_br[4]) + b_head[4:5, :])

    # attention gating
    l_feat = l_feat * l_att
    r_feat = r_feat * r_att

    # ---- regressor over torch.cat([face, leye, reye], -1) -------------------
    # expressed as three partial matmuls with the row-split L1 weight
    h1 = relu(dot(f_feat, w_r1[0]) + dot(l_feat, w_r1[1])
              + dot(r_feat, w_r1[2]) + b_head[5:6, 0:128])
    h2 = relu(dot(h1, w_r23[0]) + b_head[6:7, 0:128])        # cols 64:128 stay 0

    # lane-dense (Bp, 128) output; true (B, 2) result lives in rows [:B], cols [:2]
    o_ref[...] = dot(h2, w_r23[1]) + b_head[7:8, 0:128]


# ----------------------------------------------------------------------------
# Wrapper (flatten, row-padding, stacking, DMA-overlapped head weights)
# ----------------------------------------------------------------------------
def my_model_v7(params, leye, reye, face):
    B = leye.shape[0]
    Bp = max(8, ((B + 7) // 8) * 8)     # sublane-aligned rows per image group

    def prep(x):
        xf = x.reshape(B, -1).astype(jnp.bfloat16)   # NCHW row-major flatten
        return jnp.pad(xf, ((0, Bp - B), (0, 0)))

    # row-stacked [leye ; reye ; face], each group padded to Bp rows
    x = jnp.concatenate([prep(leye), prep(reye), prep(face)], axis=0)   # (3Bp, K)

    vmem = pl.BlockSpec(memory_space=pltpu.MemorySpace.VMEM)
    hbm = pl.BlockSpec(memory_space=pl.ANY)

    out_pad = pl.pallas_call(
        _fused_kernel,
        out_shape=jax.ShapeDtypeStruct((Bp, 128), jnp.float32),
        in_specs=[vmem, vmem, vmem, hbm, hbm, hbm, hbm],
        out_specs=vmem,
        scratch_shapes=[
            pltpu.VMEM(params["w_branch"].shape, jnp.bfloat16),   # (5, F, 256)
            pltpu.VMEM(params["w_r1"].shape, jnp.bfloat16),       # (3, 256, 128)
            pltpu.VMEM(params["w_r23"].shape, jnp.bfloat16),      # (2, 128, 128)
            pltpu.VMEM(params["b_head"].shape, jnp.float32),      # (8, 256)
            pltpu.SemaphoreType.DMA((4,)),
        ],
    )(x, params["w_bb"], params["b_bb"],
      params["w_branch"], params["w_r1"], params["w_r23"], params["b_head"])

    return out_pad[:B, :2]


def init_params(key, in_dim, feat_dim):
    keys = jax.random.split(key, 11)
    ki = iter(keys)

    def lin(k, fan_in, fan_out):
        scale = 1.0 / jnp.sqrt(jnp.float32(fan_in))
        w = jax.random.normal(k, (fan_in, fan_out), jnp.float32) * scale
        b = jnp.zeros((fan_out,), jnp.float32)
        return w, b

    # synthetic backbones (flatten -> Linear -> ReLU)
    eye_w, eye_b = lin(next(ki), in_dim, feat_dim)     # eye_channel
    att_w, att_b = lin(next(ki), in_dim, feat_dim)     # attention_branch
    face_w, face_b = lin(next(ki), in_dim, feat_dim)   # face backbone

    # head FCs
    w_face_fc, b_face_fc = lin(next(ki), feat_dim, 256)
    w_leye, b_leye = lin(next(ki), feat_dim, 256)
    w_reye, b_reye = lin(next(ki), feat_dim, 256)
    w_latt, b_latt = lin(next(ki), feat_dim, 256)
    w_ratt, b_ratt = lin(next(ki), feat_dim, 256)

    # regressor
    w_r1, b_r1 = lin(next(ki), 256 * 3, 128)
    w_r2, b_r2 = lin(next(ki), 128, 64)
    w_r3, b_r3 = lin(next(ki), 64, 2)

    bf16 = jnp.bfloat16
    p = {}

    # all three backbones fused column-wise: [eye_channel | attention | face]
    p["w_bb"] = jnp.concatenate([eye_w, att_w, face_w], axis=1).astype(bf16)   # (K, 3F)
    p["b_bb"] = jnp.concatenate([eye_b, att_b, face_b])[None, :]               # (1, 3F) f32

    # packed branch FCs, order = [face, leye, reye, latt, ratt]
    p["w_branch"] = jnp.stack(
        [w_face_fc, w_leye, w_reye, w_latt, w_ratt]).astype(bf16)              # (5, F, 256)

    # regressor L1 split row-wise by torch.cat([face, leye, reye]) order
    p["w_r1"] = jnp.stack(
        [w_r1[0:256], w_r1[256:512], w_r1[512:768]]).astype(bf16)              # (3, 256, 128)

    # regressor L2 / L3 lane-padded to (128, 128) and packed together
    w_r2_pad = jnp.zeros((128, 128), jnp.float32).at[:, :64].set(w_r2)
    w_r3_pad = jnp.zeros((128, 128), jnp.float32).at[:64, :2].set(w_r3)
    p["w_r23"] = jnp.stack([w_r2_pad, w_r3_pad]).astype(bf16)                  # (2, 128, 128)

    # packed head biases: rows 0-4 branch FCs (256 wide), 5=b_r1, 6=b_r2, 7=b_r3
    b_head = jnp.zeros((8, 256), jnp.float32)
    b_head = b_head.at[0].set(b_face_fc).at[1].set(b_leye).at[2].set(b_reye)
    b_head = b_head.at[3].set(b_latt).at[4].set(b_ratt)
    b_head = b_head.at[5, :128].set(b_r1).at[6, :64].set(b_r2).at[7, :2].set(b_r3)
    p["b_head"] = b_head
    return p


if __name__ == "__main__":
    B, C, H, W = 2, 3, 16, 16     # small NCHW images
    FEAT = 128                    # synthetic backbone output feature size

    key = jax.random.PRNGKey(0)
    k_p, k_l, k_r, k_f = jax.random.split(key, 4)

    params = init_params(k_p, C * H * W, FEAT)
    leye = jax.random.normal(k_l, (B, C, H, W), jnp.float32)
    reye = jax.random.normal(k_r, (B, C, H, W), jnp.float32)
    face = jax.random.normal(k_f, (B, C, H, W), jnp.float32)

    out = my_model_v7(params, leye, reye, face)
    out = jax.block_until_ready(out)
    assert out.shape == (B, 2) and out.dtype == jnp.float32
    assert bool(jnp.all(jnp.isfinite(out)))
    print("KERNEL_OK")
</pallas_src>

<mosaic_0001>
module attributes {stable_mosaic.version = 11 : i64} {
  func.func @_fused_kernel(%arg0: memref<24x768xbf16, #tpu.memory_space<vmem>>, %arg1: memref<768x384xbf16, #tpu.memory_space<vmem>>, %arg2: memref<1x384xf32, #tpu.memory_space<vmem>>, %arg3: memref<5x128x256xbf16, #tpu.memory_space<any>>, %arg4: memref<3x256x128xbf16, #tpu.memory_space<any>>, %arg5: memref<2x128x128xbf16, #tpu.memory_space<any>>, %arg6: memref<8x256xf32, #tpu.memory_space<any>>, %arg7: memref<8x128xf32, #tpu.memory_space<vmem>>, %arg8: memref<5x128x256xbf16, #tpu.memory_space<vmem>>, %arg9: memref<3x256x128xbf16, #tpu.memory_space<vmem>>, %arg10: memref<2x128x128xbf16, #tpu.memory_space<vmem>>, %arg11: memref<8x256xf32, #tpu.memory_space<vmem>>, %arg12: memref<4x!tpu.dma_semaphore, #tpu.memory_space<semaphore_mem>>) attributes {dimension_semantics = [], scalar_prefetch = 0 : i64, scratch_operands = 5 : i64, tpu.core_type = #tpu.core_type<tc>} {
    %c0_i32 = arith.constant 0 : i32
    %0 = tpu.memref_slice %arg12[%c0_i32] : memref<4x!tpu.dma_semaphore, #tpu.memory_space<semaphore_mem>> -> memref<1x!tpu.dma_semaphore, #tpu.memory_space<semaphore_mem>>
    %1 = tpu.memref_squeeze %0 : memref<1x!tpu.dma_semaphore, #tpu.memory_space<semaphore_mem>> -> memref<!tpu.dma_semaphore, #tpu.memory_space<semaphore_mem>>
    tpu.enqueue_dma source(%arg3 : memref<5x128x256xbf16, #tpu.memory_space<any>>) target(%arg8 : memref<5x128x256xbf16, #tpu.memory_space<vmem>>) target_semaphore(%1 : memref<!tpu.dma_semaphore, #tpu.memory_space<semaphore_mem>>)
    %c1_i32 = arith.constant 1 : i32
    %2 = tpu.memref_slice %arg12[%c1_i32] : memref<4x!tpu.dma_semaphore, #tpu.memory_space<semaphore_mem>> -> memref<1x!tpu.dma_semaphore, #tpu.memory_space<semaphore_mem>>
    %3 = tpu.memref_squeeze %2 : memref<1x!tpu.dma_semaphore, #tpu.memory_space<semaphore_mem>> -> memref<!tpu.dma_semaphore, #tpu.memory_space<semaphore_mem>>
    tpu.enqueue_dma source(%arg4 : memref<3x256x128xbf16, #tpu.memory_space<any>>) target(%arg9 : memref<3x256x128xbf16, #tpu.memory_space<vmem>>) target_semaphore(%3 : memref<!tpu.dma_semaphore, #tpu.memory_space<semaphore_mem>>)
    %c2_i32 = arith.constant 2 : i32
    %4 = tpu.memref_slice %arg12[%c2_i32] : memref<4x!tpu.dma_semaphore, #tpu.memory_space<semaphore_mem>> -> memref<1x!tpu.dma_semaphore, #tpu.memory_space<semaphore_mem>>
    %5 = tpu.memref_squeeze %4 : memref<1x!tpu.dma_semaphore, #tpu.memory_space<semaphore_mem>> -> memref<!tpu.dma_semaphore, #tpu.memory_space<semaphore_mem>>
    tpu.enqueue_dma source(%arg5 : memref<2x128x128xbf16, #tpu.memory_space<any>>) target(%arg10 : memref<2x128x128xbf16, #tpu.memory_space<vmem>>) target_semaphore(%5 : memref<!tpu.dma_semaphore, #tpu.memory_space<semaphore_mem>>)
    %c3_i32 = arith.constant 3 : i32
    %6 = tpu.memref_slice %arg12[%c3_i32] : memref<4x!tpu.dma_semaphore, #tpu.memory_space<semaphore_mem>> -> memref<1x!tpu.dma_semaphore, #tpu.memory_space<semaphore_mem>>
    %7 = tpu.memref_squeeze %6 : memref<1x!tpu.dma_semaphore, #tpu.memory_space<semaphore_mem>> -> memref<!tpu.dma_semaphore, #tpu.memory_space<semaphore_mem>>
    tpu.enqueue_dma source(%arg6 : memref<8x256xf32, #tpu.memory_space<any>>) target(%arg11 : memref<8x256xf32, #tpu.memory_space<vmem>>) target_semaphore(%7 : memref<!tpu.dma_semaphore, #tpu.memory_space<semaphore_mem>>)
    %c0 = arith.constant 0 : index
    %c0_0 = arith.constant 0 : index
    %8 = vector.load %arg0[%c0, %c0_0] : memref<24x768xbf16, #tpu.memory_space<vmem>>, vector<24x768xbf16>
    %c0_1 = arith.constant 0 : index
    %c0_2 = arith.constant 0 : index
    %9 = vector.load %arg1[%c0_1, %c0_2] : memref<768x384xbf16, #tpu.memory_space<vmem>>, vector<768x384xbf16>
    %cst = arith.constant dense<0.000000e+00> : vector<24x384xf32>
    %10 = tpu.matmul %8, %9, %cst {dimension_numbers = #tpu.dot_dimension_numbers<[1], [0], [0], [1], [0, 0, 1, 1], [], []>} : vector<24x768xbf16>, vector<768x384xbf16>, vector<24x384xf32> -> vector<24x384xf32>
    %c0_3 = arith.constant 0 : index
    %c0_4 = arith.constant 0 : index
    %11 = vector.load %arg2[%c0_3, %c0_4] : memref<1x384xf32, #tpu.memory_space<vmem>>, vector<1x384xf32>
    %12 = vector.broadcast %11 : vector<1x384xf32> to vector<24x384xf32>
    %13 = arith.addf %10, %12 : vector<24x384xf32>
    %cst_5 = arith.constant 0.000000e+00 : f32
    %14 = vector.broadcast %cst_5 : f32 to vector<24x384xf32>
    %15 = arith.maximumf %13, %14 : vector<24x384xf32>
    %16 = vector.extract_strided_slice %15 {offsets = [0, 0], sizes = [8, 128], strides = [1, 1]} : vector<24x384xf32> to vector<8x128xf32>
    %17 = vector.extract_strided_slice %15 {offsets = [8, 0], sizes = [8, 128], strides = [1, 1]} : vector<24x384xf32> to vector<8x128xf32>
    %18 = vector.extract_strided_slice %15 {offsets = [0, 128], sizes = [8, 128], strides = [1, 1]} : vector<24x384xf32> to vector<8x128xf32>
    %19 = vector.extract_strided_slice %15 {offsets = [8, 128], sizes = [8, 128], strides = [1, 1]} : vector<24x384xf32> to vector<8x128xf32>
    %20 = vector.extract_strided_slice %15 {offsets = [16, 256], sizes = [8, 128], strides = [1, 1]} : vector<24x384xf32> to vector<8x128xf32>
    %c0_i32_6 = arith.constant 0 : i32
    %21 = tpu.memref_slice %arg12[%c0_i32_6] : memref<4x!tpu.dma_semaphore, #tpu.memory_space<semaphore_mem>> -> memref<1x!tpu.dma_semaphore, #tpu.memory_space<semaphore_mem>>
    %22 = tpu.memref_squeeze %21 : memref<1x!tpu.dma_semaphore, #tpu.memory_space<semaphore_mem>> -> memref<!tpu.dma_semaphore, #tpu.memory_space<semaphore_mem>>
    tpu.wait_dma2 semaphore(%22 : memref<!tpu.dma_semaphore, #tpu.memory_space<semaphore_mem>>) src(%arg3 : memref<5x128x256xbf16, #tpu.memory_space<any>>) dst(%arg8 : memref<5x128x256xbf16, #tpu.memory_space<vmem>>)
    %c1_i32_7 = arith.constant 1 : i32
    %23 = tpu.memref_slice %arg12[%c1_i32_7] : memref<4x!tpu.dma_semaphore, #tpu.memory_space<semaphore_mem>> -> memref<1x!tpu.dma_semaphore, #tpu.memory_space<semaphore_mem>>
    %24 = tpu.memref_squeeze %23 : memref<1x!tpu.dma_semaphore, #tpu.memory_space<semaphore_mem>> -> memref<!tpu.dma_semaphore, #tpu.memory_space<semaphore_mem>>
    tpu.wait_dma2 semaphore(%24 : memref<!tpu.dma_semaphore, #tpu.memory_space<semaphore_mem>>) src(%arg4 : memref<3x256x128xbf16, #tpu.memory_space<any>>) dst(%arg9 : memref<3x256x128xbf16, #tpu.memory_space<vmem>>)
    %c2_i32_8 = arith.constant 2 : i32
    %25 = tpu.memref_slice %arg12[%c2_i32_8] : memref<4x!tpu.dma_semaphore, #tpu.memory_space<semaphore_mem>> -> memref<1x!tpu.dma_semaphore, #tpu.memory_space<semaphore_mem>>
    %26 = tpu.memref_squeeze %25 : memref<1x!tpu.dma_semaphore, #tpu.memory_space<semaphore_mem>> -> memref<!tpu.dma_semaphore, #tpu.memory_space<semaphore_mem>>
    tpu.wait_dma2 semaphore(%26 : memref<!tpu.dma_semaphore, #tpu.memory_space<semaphore_mem>>) src(%arg5 : memref<2x128x128xbf16, #tpu.memory_space<any>>) dst(%arg10 : memref<2x128x128xbf16, #tpu.memory_space<vmem>>)
    %c3_i32_9 = arith.constant 3 : i32
    %27 = tpu.memref_slice %arg12[%c3_i32_9] : memref<4x!tpu.dma_semaphore, #tpu.memory_space<semaphore_mem>> -> memref<1x!tpu.dma_semaphore, #tpu.memory_space<semaphore_mem>>
    %28 = tpu.memref_squeeze %27 : memref<1x!tpu.dma_semaphore, #tpu.memory_space<semaphore_mem>> -> memref<!tpu.dma_semaphore, #tpu.memory_space<semaphore_mem>>
    tpu.wait_dma2 semaphore(%28 : memref<!tpu.dma_semaphore, #tpu.memory_space<semaphore_mem>>) src(%arg6 : memref<8x256xf32, #tpu.memory_space<any>>) dst(%arg11 : memref<8x256xf32, #tpu.memory_space<vmem>>)
    %c0_10 = arith.constant 0 : index
    %c0_11 = arith.constant 0 : index
    %c0_12 = arith.constant 0 : index
    %29 = vector.load %arg8[%c0_10, %c0_11, %c0_12] : memref<5x128x256xbf16, #tpu.memory_space<vmem>>, vector<1x128x256xbf16>
    %30 = vector.shape_cast %29 : vector<1x128x256xbf16> to vector<128x256xbf16>
    %31 = arith.truncf %20 : vector<8x128xf32> to vector<8x128xbf16>
    %cst_13 = arith.constant dense<0.000000e+00> : vector<8x256xf32>
    %32 = tpu.matmul %31, %30, %cst_13 {dimension_numbers = #tpu.dot_dimension_numbers<[1], [0], [0], [1], [0, 0, 1, 1], [], []>} : vector<8x128xbf16>, vector<128x256xbf16>, vector<8x256xf32> -> vector<8x256xf32>
    %c0_14 = arith.constant 0 : index
    %c0_15 = arith.constant 0 : index
    %33 = vector.load %arg11[%c0_14, %c0_15] : memref<8x256xf32, #tpu.memory_space<vmem>>, vector<1x256xf32>
    %34 = vector.broadcast %33 : vector<1x256xf32> to vector<8x256xf32>
    %35 = arith.addf %32, %34 : vector<8x256xf32>
    %cst_16 = arith.constant 0.000000e+00 : f32
    %36 = vector.broadcast %cst_16 : f32 to vector<8x256xf32>
    %37 = arith.maximumf %35, %36 : vector<8x256xf32>
    %c1 = arith.constant 1 : index
    %c0_17 = arith.constant 0 : index
    %c0_18 = arith.constant 0 : index
    %38 = vector.load %arg8[%c1, %c0_17, %c0_18] : memref<5x128x256xbf16, #tpu.memory_space<vmem>>, vector<1x128x256xbf16>
    %39 = vector.shape_cast %38 : vector<1x128x256xbf16> to vector<128x256xbf16>
    %40 = arith.truncf %16 : vector<8x128xf32> to vector<8x128xbf16>
    %cst_19 = arith.constant dense<0.000000e+00> : vector<8x256xf32>
    %41 = tpu.matmul %40, %39, %cst_19 {dimension_numbers = #tpu.dot_dimension_numbers<[1], [0], [0], [1], [0, 0, 1, 1], [], []>} : vector<8x128xbf16>, vector<128x256xbf16>, vector<8x256xf32> -> vector<8x256xf32>
    %c1_20 = arith.constant 1 : index
    %c0_21 = arith.constant 0 : index
    %42 = vector.load %arg11[%c1_20, %c0_21] : memref<8x256xf32, #tpu.memory_space<vmem>>, vector<1x256xf32>
    %43 = vector.broadcast %42 : vector<1x256xf32> to vector<8x256xf32>
    %44 = arith.addf %41, %43 : vector<8x256xf32>
    %cst_22 = arith.constant 0.000000e+00 : f32
    %45 = vector.broadcast %cst_22 : f32 to vector<8x256xf32>
    %46 = arith.maximumf %44, %45 : vector<8x256xf32>
    %c2 = arith.constant 2 : index
    %c0_23 = arith.constant 0 : index
    %c0_24 = arith.constant 0 : index
    %47 = vector.load %arg8[%c2, %c0_23, %c0_24] : memref<5x128x256xbf16, #tpu.memory_space<vmem>>, vector<1x128x256xbf16>
    %48 = vector.shape_cast %47 : vector<1x128x256xbf16> to vector<128x256xbf16>
    %49 = arith.truncf %17 : vector<8x128xf32> to vector<8x128xbf16>
    %cst_25 = arith.constant dense<0.000000e+00> : vector<8x256xf32>
    %50 = tpu.matmul %49, %48, %cst_25 {dimension_numbers = #tpu.dot_dimension_numbers<[1], [0], [0], [1], [0, 0, 1, 1], [], []>} : vector<8x128xbf16>, vector<128x256xbf16>, vector<8x256xf32> -> vector<8x256xf32>
    %c2_26 = arith.constant 2 : index
    %c0_27 = arith.constant 0 : index
    %51 = vector.load %arg11[%c2_26, %c0_27] : memref<8x256xf32, #tpu.memory_space<vmem>>, vector<1x256xf32>
    %52 = vector.broadcast %51 : vector<1x256xf32> to vector<8x256xf32>
    %53 = arith.addf %50, %52 : vector<8x256xf32>
    %cst_28 = arith.constant 0.000000e+00 : f32
    %54 = vector.broadcast %cst_28 : f32 to vector<8x256xf32>
    %55 = arith.maximumf %53, %54 : vector<8x256xf32>
    %c3 = arith.constant 3 : index
    %c0_29 = arith.constant 0 : index
    %c0_30 = arith.constant 0 : index
    %56 = vector.load %arg8[%c3, %c0_29, %c0_30] : memref<5x128x256xbf16, #tpu.memory_space<vmem>>, vector<1x128x256xbf16>
    %57 = vector.shape_cast %56 : vector<1x128x256xbf16> to vector<128x256xbf16>
    %58 = arith.truncf %18 : vector<8x128xf32> to vector<8x128xbf16>
    %cst_31 = arith.constant dense<0.000000e+00> : vector<8x256xf32>
    %59 = tpu.matmul %58, %57, %cst_31 {dimension_numbers = #tpu.dot_dimension_numbers<[1], [0], [0], [1], [0, 0, 1, 1], [], []>} : vector<8x128xbf16>, vector<128x256xbf16>, vector<8x256xf32> -> vector<8x256xf32>
    %c3_32 = arith.constant 3 : index
    %c0_33 = arith.constant 0 : index
    %60 = vector.load %arg11[%c3_32, %c0_33] : memref<8x256xf32, #tpu.memory_space<vmem>>, vector<1x256xf32>
    %61 = vector.broadcast %60 : vector<1x256xf32> to vector<8x256xf32>
    %62 = arith.addf %59, %61 : vector<8x256xf32>
    %63 = arith.negf %62 : vector<8x256xf32>
    %64 = math.exp %63 : vector<8x256xf32>
    %cst_34 = arith.constant 1.000000e+00 : f32
    %65 = vector.broadcast %cst_34 : f32 to vector<8x256xf32>
    %66 = arith.addf %65, %64 : vector<8x256xf32>
    %67 = arith.divf %65, %66 : vector<8x256xf32>
    %c4 = arith.constant 4 : index
    %c0_35 = arith.constant 0 : index
    %c0_36 = arith.constant 0 : index
    %68 = vector.load %arg8[%c4, %c0_35, %c0_36] : memref<5x128x256xbf16, #tpu.memory_space<vmem>>, vector<1x128x256xbf16>
    %69 = vector.shape_cast %68 : vector<1x128x256xbf16> to vector<128x256xbf16>
    %70 = arith.truncf %19 : vector<8x128xf32> to vector<8x128xbf16>
    %cst_37 = arith.constant dense<0.000000e+00> : vector<8x256xf32>
    %71 = tpu.matmul %70, %69, %cst_37 {dimension_numbers = #tpu.dot_dimension_numbers<[1], [0], [0], [1], [0, 0, 1, 1], [], []>} : vector<8x128xbf16>, vector<128x256xbf16>, vector<8x256xf32> -> vector<8x256xf32>
    %c4_38 = arith.constant 4 : index
    %c0_39 = arith.constant 0 : index
    %72 = vector.load %arg11[%c4_38, %c0_39] : memref<8x256xf32, #tpu.memory_space<vmem>>, vector<1x256xf32>
    %73 = vector.broadcast %72 : vector<1x256xf32> to vector<8x256xf32>
    %74 = arith.addf %71, %73 : vector<8x256xf32>
    %75 = arith.negf %74 : vector<8x256xf32>
    %76 = math.exp %75 : vector<8x256xf32>
    %cst_40 = arith.constant 1.000000e+00 : f32
    %77 = vector.broadcast %cst_40 : f32 to vector<8x256xf32>
    %78 = arith.addf %77, %76 : vector<8x256xf32>
    %79 = arith.divf %77, %78 : vector<8x256xf32>
    %80 = arith.mulf %46, %67 : vector<8x256xf32>
    %81 = arith.mulf %55, %79 : vector<8x256xf32>
    %c0_41 = arith.constant 0 : index
    %c0_42 = arith.constant 0 : index
    %c0_43 = arith.constant 0 : index
    %82 = vector.load %arg9[%c0_41, %c0_42, %c0_43] : memref<3x256x128xbf16, #tpu.memory_space<vmem>>, vector<1x256x128xbf16>
    %83 = vector.shape_cast %82 : vector<1x256x128xbf16> to vector<256x128xbf16>
    %84 = arith.truncf %37 : vector<8x256xf32> to vector<8x256xbf16>
    %cst_44 = arith.constant dense<0.000000e+00> : vector<8x128xf32>
    %85 = tpu.matmul %84, %83, %cst_44 {dimension_numbers = #tpu.dot_dimension_numbers<[1], [0], [0], [1], [0, 0, 1, 1], [], []>} : vector<8x256xbf16>, vector<256x128xbf16>, vector<8x128xf32> -> vector<8x128xf32>
    %c1_45 = arith.constant 1 : index
    %c0_46 = arith.constant 0 : index
    %c0_47 = arith.constant 0 : index
    %86 = vector.load %arg9[%c1_45, %c0_46, %c0_47] : memref<3x256x128xbf16, #tpu.memory_space<vmem>>, vector<1x256x128xbf16>
    %87 = vector.shape_cast %86 : vector<1x256x128xbf16> to vector<256x128xbf16>
    %88 = arith.truncf %80 : vector<8x256xf32> to vector<8x256xbf16>
    %cst_48 = arith.constant dense<0.000000e+00> : vector<8x128xf32>
    %89 = tpu.matmul %88, %87, %cst_48 {dimension_numbers = #tpu.dot_dimension_numbers<[1], [0], [0], [1], [0, 0, 1, 1], [], []>} : vector<8x256xbf16>, vector<256x128xbf16>, vector<8x128xf32> -> vector<8x128xf32>
    %90 = arith.addf %85, %89 : vector<8x128xf32>
    %c2_49 = arith.constant 2 : index
    %c0_50 = arith.constant 0 : index
    %c0_51 = arith.constant 0 : index
    %91 = vector.load %arg9[%c2_49, %c0_50, %c0_51] : memref<3x256x128xbf16, #tpu.memory_space<vmem>>, vector<1x256x128xbf16>
    %92 = vector.shape_cast %91 : vector<1x256x128xbf16> to vector<256x128xbf16>
    %93 = arith.truncf %81 : vector<8x256xf32> to vector<8x256xbf16>
    %cst_52 = arith.constant dense<0.000000e+00> : vector<8x128xf32>
    %94 = tpu.matmul %93, %92, %cst_52 {dimension_numbers = #tpu.dot_dimension_numbers<[1], [0], [0], [1], [0, 0, 1, 1], [], []>} : vector<8x256xbf16>, vector<256x128xbf16>, vector<8x128xf32> -> vector<8x128xf32>
    %95 = arith.addf %90, %94 : vector<8x128xf32>
    %c5 = arith.constant 5 : index
    %c0_53 = arith.constant 0 : index
    %96 = vector.load %arg11[%c5, %c0_53] : memref<8x256xf32, #tpu.memory_space<vmem>>, vector<1x128xf32>
    %97 = vector.broadcast %96 : vector<1x128xf32> to vector<8x128xf32>
    %98 = arith.addf %95, %97 : vector<8x128xf32>
    %cst_54 = arith.constant 0.000000e+00 : f32
    %99 = vector.broadcast %cst_54 : f32 to vector<8x128xf32>
    %100 = arith.maximumf %98, %99 : vector<8x128xf32>
    %c0_55 = arith.constant 0 : index
    %c0_56 = arith.constant 0 : index
    %c0_57 = arith.constant 0 : index
    %101 = vector.load %arg10[%c0_55, %c0_56, %c0_57] : memref<2x128x128xbf16, #tpu.memory_space<vmem>>, vector<1x128x128xbf16>
    %102 = vector.shape_cast %101 : vector<1x128x128xbf16> to vector<128x128xbf16>
    %103 = arith.truncf %100 : vector<8x128xf32> to vector<8x128xbf16>
    %cst_58 = arith.constant dense<0.000000e+00> : vector<8x128xf32>
    %104 = tpu.matmul %103, %102, %cst_58 {dimension_numbers = #tpu.dot_dimension_numbers<[1], [0], [0], [1], [0, 0, 1, 1], [], []>} : vector<8x128xbf16>, vector<128x128xbf16>, vector<8x128xf32> -> vector<8x128xf32>
    %c6 = arith.constant 6 : index
    %c0_59 = arith.constant 0 : index
    %105 = vector.load %arg11[%c6, %c0_59] : memref<8x256xf32, #tpu.memory_space<vmem>>, vector<1x128xf32>
    %106 = vector.broadcast %105 : vector<1x128xf32> to vector<8x128xf32>
    %107 = arith.addf %104, %106 : vector<8x128xf32>
    %cst_60 = arith.constant 0.000000e+00 : f32
    %108 = vector.broadcast %cst_60 : f32 to vector<8x128xf32>
    %109 = arith.maximumf %107, %108 : vector<8x128xf32>
    %c1_61 = arith.constant 1 : index
    %c0_62 = arith.constant 0 : index
    %c0_63 = arith.constant 0 : index
    %110 = vector.load %arg10[%c1_61, %c0_62, %c0_63] : memref<2x128x128xbf16, #tpu.memory_space<vmem>>, vector<1x128x128xbf16>
    %111 = vector.shape_cast %110 : vector<1x128x128xbf16> to vector<128x128xbf16>
    %112 = arith.truncf %109 : vector<8x128xf32> to vector<8x128xbf16>
    %cst_64 = arith.constant dense<0.000000e+00> : vector<8x128xf32>
    %113 = tpu.matmul %112, %111, %cst_64 {dimension_numbers = #tpu.dot_dimension_numbers<[1], [0], [0], [1], [0, 0, 1, 1], [], []>} : vector<8x128xbf16>, vector<128x128xbf16>, vector<8x128xf32> -> vector<8x128xf32>
    %c7 = arith.constant 7 : index
    %c0_65 = arith.constant 0 : index
    %114 = vector.load %arg11[%c7, %c0_65] : memref<8x256xf32, #tpu.memory_space<vmem>>, vector<1x128xf32>
    %115 = vector.broadcast %114 : vector<1x128xf32> to vector<8x128xf32>
    %116 = arith.addf %113, %115 : vector<8x128xf32>
    %c0_66 = arith.constant 0 : index
    %c0_67 = arith.constant 0 : index
    %117 = vector.load %arg7[%c0_66, %c0_67] : memref<8x128xf32, #tpu.memory_space<vmem>>, vector<8x128xf32>
    tpu.vector_store %arg7[%c0_66, %c0_67], %116 {strides = array<i32>} : memref<8x128xf32, #tpu.memory_space<vmem>>, vector<8x128xf32>,
    return
  }
}

</mosaic_0001>

<bundles_post_ra>
// kernel: tpu_custom_call.1
= control target key start
LH: loop header
LB: loop body
LE: loop exit
PB: predicated region body
PF: predicated region fallthrough
CT: control target
= control target key end

     0   :  { %12 = vsyncpa [#allocation8], 0  ;;  %s4289_s0 = inlined_call_operand.hbm [shape: bf16[24,768], index: 0, kind: input, shape index: {}]   ;;  %s4290_s1 = inlined_call_operand.hbm [shape: bf16[768,384], index: 1, kind: input, shape index: {}]   ;;  %s4291_s2 = inlined_call_operand.vmem [shape: f32[1,384], index: 2, kind: input, shape index: {}]   ;;  %s4292_s3 = inlined_call_operand.hbm [shape: bf16[5,128,256], index: 3, kind: input, shape index: {}]   ;;  %s4293_s4 = inlined_call_operand.hbm [shape: bf16[3,256,128], index: 4, kind: input, shape index: {}]   ;;  %s4294_s5 = inlined_call_operand.hbm [shape: bf16[2,128,128], index: 5, kind: input, shape index: {}]   ;;  %s4295_s6 = inlined_call_operand.hbm [shape: f32[8,256], index: 6, kind: input, shape index: {}]   ;;  %s4296_s7 = inlined_call_operand.hbm [shape: f32[8,128], index: 7, kind: output, shape index: {}]  }
   0x1   :  { %13 = vsyncpa [#allocation11], 0 }
   0x2   :  { %14 = vsyncpa [#allocation9], 0  ;;  %s4098_s24 = smov [#allocation7]  }
   0x3   :  { %s20_s25 = sshll.u32 %s4098_s24, 4  ;;  %s21_s25 = int_to_ptr.vmem [resolvable:$true] %s20_s25 }
   0x4   :  { %s3952_s26 = scalar_lea.vmem %s21_s25, 1152  ;;  %p3957_p1 = scmp.lt.s32.totalorder %s21_s25, %s21_s25 }
   0x5   :  { %p3953_p0 = scmp.ne.s32.totalorder %s21_s25, %s3952_s26  ;;  %p3958_p2 = scmp.lt.s32.totalorder %s3952_s26, %s3952_s26 }
   0x7   :  { %p3959_p3 = por %p3958_p2, %p3957_p1 }
   0x9   :  { %p3960_p4 = pnand %p3959_p3, %p3953_p0 }
   0xb   :  { %3963 = shalt.err (!%p3960_p4)
}
   0xc   :  { %s4099_s27 = smov 384   ;;  %s4100_s28 = smov 24  }
   0xd   :  { %26 = dma.hbm_to_vmem [thread:$0]  %s4289_s0, 1152, %s21_s25, [#allocation8], %s4099_s27, %s4099_s27, %s4100_s28  }
   0xe   :  { %s4101_s8 = smov [#allocation10]  }
   0xf   :  { %s32_s9 = sshll.u32 %s4101_s8, 4  ;;  %s33_s9 = int_to_ptr.vmem [resolvable:$true] %s32_s9 }
  0x10   :  { %s3972_s10 = scalar_lea.vmem %s33_s9, 18432  ;;  %p3977_p6 = scmp.lt.s32.totalorder %s33_s9, %s33_s9 }
  0x11   :  { %p3973_p5 = scmp.ne.s32.totalorder %s33_s9, %s3972_s10  ;;  %p3978_p7 = scmp.lt.s32.totalorder %s3972_s10, %s3972_s10 }
  0x13   :  { %p3979_p8 = por %p3978_p7, %p3977_p6 }
  0x15   :  { %p3980_p9 = pnand %p3979_p8, %p3973_p5 }
  0x17   :  { %3983 = shalt.err (!%p3980_p9)
}
  0x18   :  { %s4102_s11 = smov 192   ;;  %s4103_s12 = smov 12  }
  0x19   :  { %38 = dma.hbm_to_vmem [thread:$0]  %s4290_s1, 18432, %s33_s9, [#allocation11], %s4102_s11, %s4102_s11, %s4103_s12  }
  0x1a   :  { %4084 = dma.done.wait [#allocation8], 1152  }
  0x1b   :  { %4085 = vsyncadd [#allocation8], 4294966144 }
  0x1c   :  { %4086 = dma.done.wait [#allocation11], 18432  }
  0x1d   :  { %4087 = vsyncadd [#allocation11], 4294948864  ;;  %v3537_v0 = vld [vmem:[#allocation10 + $0xac] ss:$12 sps:$4 sm:$0xff]   ;;  %v3539_v1 = vld [vmem:[#allocation10 + $0xa8] ss:$12 sps:$4 sm:$0xff]  }
  0x1e   :  { %1132 = vmatprep.subr.bf16.mxu0 %v3537_v0  ;;  %v3540_v2 = vld [vmem:[#allocation10 + $0x22c] ss:$12 sps:$4 sm:$0xff]   ;;  %v3542_v3 = vld [vmem:[#allocation10 + $0x228] ss:$12 sps:$4 sm:$0xff]   ;;  %v3545_v5 = vld [vmem:[#allocation10 + $0x90] ss:$12 sps:$4 sm:$0xff]  }
  0x1f   :  { %1133 = vmatpush1.bf16.msra.mxu0 %v3539_v1  ;;  %v3543_v4 = vld [vmem:[#allocation10 + $0x94] ss:$12 sps:$4 sm:$0xff]   ;;  %1181 = vmatprep.subr.bf16.mxu1 %v3540_v2  ;;  %v3548_v7 = vld [vmem:[#allocation10 + $0x210] ss:$12 sps:$4 sm:$0xff]   ;;  %v3551_v9 = vld [vmem:[#allocation10 + $0x78] ss:$12 sps:$4 sm:$0xff]  }
  0x20   :  { %v3546_v6 = vld [vmem:[#allocation10 + $0x214] ss:$12 sps:$4 sm:$0xff]   ;;  %1182 = vmatpush1.bf16.msra.mxu1 %v3542_v3  ;;  %1134 = vmatprep.subr.bf16.mxu0 %v3543_v4  ;;  %v3549_v8 = vld [vmem:[#allocation10 + $0x7c] ss:$12 sps:$4 sm:$0xff]   ;;  %v3555_v11 = vld [vmem:[#allocation10 + $0x64] ss:$12 sps:$4 sm:$0xff]  }
  0x21   :  { %1183 = vmatprep.subr.bf16.mxu1 %v3546_v6  ;;  %v3552_v10 = vld [vmem:[#allocation10 + $0x1fc] ss:$12 sps:$4 sm:$0xff]   ;;  %v3554_v12 = vld [vmem:[#allocation10 + $0x1f8] ss:$12 sps:$4 sm:$0xff]   ;;  %v3557_v14 = vld [vmem:[#allocation10 + $0x60] ss:$12 sps:$4 sm:$0xff]  }
  0x22   :  { %v3558_v13 = vld [vmem:[#allocation10 + $0x1e4] ss:$12 sps:$4 sm:$0xff]   ;;  %v3561_v15 = vld [vmem:[#allocation10 + $0x4c] ss:$12 sps:$4 sm:$0xff]   ;;  %v3563_v18 = vld [vmem:[#allocation10 + $0x48] ss:$12 sps:$4 sm:$0xff]  }
  0x23   :  { %1135 = vmatpush1.bf16.msra.mxu0 %v3545_v5  ;;  %v3560_v16 = vld [vmem:[#allocation10 + $0x1e0] ss:$12 sps:$4 sm:$0xff]   ;;  %v3566_v20 = vld [vmem:[#allocation10 + $0x1c8] ss:$12 sps:$4 sm:$0xff]   ;;  %v3569_v22 = vld [vmem:[#allocation10 + $0x30] ss:$12 sps:$4 sm:$0xff]  }
  0x24   :  { %1136 = vmatprep.subr.bf16.mxu0 %v3549_v8  ;;  %1184 = vmatpush1.bf16.msra.mxu1 %v3548_v7  ;;  %v3564_v17 = vld [vmem:[#allocation10 + $0x1cc] ss:$12 sps:$4 sm:$0xff]   ;;  %v3567_v19 = vld [vmem:[#allocation10 + $0x34] ss:$12 sps:$4 sm:$0xff]   ;;  %v3573_v23 = vld [vmem:[#allocation10 + $0x1c] ss:$12 sps:$4 sm:$0xff]  }
  0x25   :  { %1185 = vmatprep.subr.bf16.mxu1 %v3552_v10  ;;  %v3570_v21 = vld [vmem:[#allocation10 + $0x1b4] ss:$12 sps:$4 sm:$0xff]   ;;  %v3572_v24 = vld [vmem:[#allocation10 + $0x1b0] ss:$12 sps:$4 sm:$0xff]   ;;  %v3575_v26 = vld [vmem:[#allocation10 + $0x18] ss:$12 sps:$4 sm:$0xff]  }
  0x26   :  { %v3576_v25 = vld [vmem:[#allocation10 + $0x19c] ss:$12 sps:$4 sm:$0xff]   ;;  %v3579_v27 = vld [vmem:[#allocation10 + $0x4] ss:$12 sps:$4 sm:$0xff]   ;;  %v3581_v30 = vld [vmem:[#allocation10] ss:$12 sps:$4 sm:$0xff]  }
  0x27   :  { %1137 = vmatpush1.bf16.msra.mxu0 %v3551_v9  ;;  %v3578_v28 = vld [vmem:[#allocation10 + $0x198] ss:$12 sps:$4 sm:$0xff]   ;;  %v3584_v32 = vld [vmem:[#allocation10 + $0x180] ss:$12 sps:$4 sm:$0xff]   ;;  %v3587_v34 = vld [vmem:[#allocation10 + $0x168] ss:$12 sps:$4 sm:$0xff]  }
  0x28   :  { %1138 = vmatprep.subr.bf16.mxu0 %v3555_v11  ;;  %1186 = vmatpush1.bf16.msra.mxu1 %v3554_v12  ;;  %v3582_v29 = vld [vmem:[#allocation10 + $0x184] ss:$12 sps:$4 sm:$0xff]   ;;  %v3585_v31 = vld [vmem:[#allocation10 + $0x16c] ss:$12 sps:$4 sm:$0xff]   ;;  %v3591_v35 = vld [vmem:[#allocation10 + $0x154] ss:$12 sps:$4 sm:$0xff]  }
  0x29   :  { %1187 = vmatprep.subr.bf16.mxu1 %v3558_v13  ;;  %v3588_v33 = vld [vmem:[#allocation10 + $0x2ec] ss:$12 sps:$4 sm:$0xff]   ;;  %v3590_v36 = vld [vmem:[#allocation10 + $0x2e8] ss:$12 sps:$4 sm:$0xff]   ;;  %v3593_v38 = vld [vmem:[#allocation10 + $0x150] ss:$12 sps:$4 sm:$0xff]  }
  0x2a   :  { %v3594_v37 = vld [vmem:[#allocation10 + $0x2d4] ss:$12 sps:$4 sm:$0xff]   ;;  %v3597_v39 = vld [vmem:[#allocation10 + $0x13c] ss:$12 sps:$4 sm:$0xff]   ;;  %v3599_v42 = vld [vmem:[#allocation10 + $0x138] ss:$12 sps:$4 sm:$0xff]  }
  0x2b   :  { %1139 = vmatpush1.bf16.msra.mxu0 %v3557_v14  ;;  %v3596_v40 = vld [vmem:[#allocation10 + $0x2d0] ss:$12 sps:$4 sm:$0xff]   ;;  %v3602_v44 = vld [vmem:[#allocation10 + $0x2b8] ss:$12 sps:$4 sm:$0xff]   ;;  %v3605_v46 = vld [vmem:[#allocation10 + $0x120] ss:$12 sps:$4 sm:$0xff]  }
  0x2c   :  { %1140 = vmatprep.subr.bf16.mxu0 %v3561_v15  ;;  %1188 = vmatpush1.bf16.msra.mxu1 %v3560_v16  ;;  %v3600_v41 = vld [vmem:[#allocation10 + $0x2bc] ss:$12 sps:$4 sm:$0xff]   ;;  %v3603_v43 = vld [vmem:[#allocation10 + $0x124] ss:$12 sps:$4 sm:$0xff]   ;;  %v3609_v48 = vld [vmem:[#allocation10 + $0x10c] ss:$12 sps:$4 sm:$0xff]  }
  0x2d   :  { %1189 = vmatprep.subr.bf16.mxu1 %v3564_v17  ;;  %v3606_v45 = vld [vmem:[#allocation10 + $0x2a4] ss:$12 sps:$4 sm:$0xff]   ;;  %v4158_v47 = vld [vmem:[#allocation7 + $0x4] ss:$24 sps:$4 sm:$0xff]   ;;  %v3608_v49 = vld [vmem:[#allocation10 + $0x2a0] ss:$12 sps:$4 sm:$0xff]  }
  0x2e   :  { %1164 = vmatprep.mubr.bf16.mxu0 %v4158_v47  ;;  %v3612_v50 = vld [vmem:[#allocation10 + $0x28c] ss:$12 sps:$4 sm:$0xff]   ;;  %v4161_v51 = vld [vmem:[#allocation7 + $0xc] ss:$24 sps:$4 sm:$0xff]   ;;  %v3611_v52 = vld [vmem:[#allocation10 + $0x108] ss:$12 sps:$4 sm:$0xff]  }
  0x2f   :  { %1141 = vmatpush1.bf16.msra.mxu0 %v3563_v18  ;;  %v3615_v53 = vld [vmem:[#allocation10 + $0xf4] ss:$12 sps:$4 sm:$0xff]   ;;  %1213 = vmatprep.mubr.bf16.mxu1 %v4161_v51  ;;  %v3617_v56 = vld [vmem:[#allocation10 + $0xf0] ss:$12 sps:$4 sm:$0xff]   ;;  %v3623_v60 = vld [vmem:[#allocation10 + $0xd8] ss:$12 sps:$4 sm:$0xff]  }
  0x30   :  { %1142 = vmatprep.subr.bf16.mxu0 %v3567_v19  ;;  %1190 = vmatpush1.bf16.msra.mxu1 %v3566_v20  ;;  %v3614_v54 = vld [vmem:[#allocation10 + $0x288] ss:$12 sps:$4 sm:$0xff]   ;;  %v3620_v58 = vld [vmem:[#allocation10 + $0x270] ss:$12 sps:$4 sm:$0xff]   ;;  %v3626_v62 = vld [vmem:[#allocation10 + $0x258] ss:$12 sps:$4 sm:$0xff]  }
  0x31   :  { %1191 = vmatprep.subr.bf16.mxu1 %v3570_v21  ;;  %v3618_v55 = vld [vmem:[#allocation10 + $0x274] ss:$12 sps:$4 sm:$0xff]   ;;  %v3621_v57 = vld [vmem:[#allocation10 + $0xdc] ss:$12 sps:$4 sm:$0xff]   ;;  %v3627_v61 = vld [vmem:[#allocation10 + $0xc4] ss:$12 sps:$4 sm:$0xff]  }
  0x32   :  { %v3624_v59 = vld [vmem:[#allocation10 + $0x25c] ss:$12 sps:$4 sm:$0xff]   ;;  %v3630_v63 = vld [vmem:[#allocation10 + $0x244] ss:$12 sps:$4 sm:$0xff]   ;;  %v3629_v0 = vld [vmem:[#allocation10 + $0xc0] ss:$12 sps:$4 sm:$0xff]  }
  0x33   :  { %1143 = vmatpush1.bf16.msra.mxu0 %v3569_v22  ;;  %v4164_v1 = vld [vmem:[#allocation7] ss:$24 sps:$4 sm:$0xff]   ;;  %v3635_v3 = vld [vmem:[#allocation10 + $0x240] ss:$12 sps:$4 sm:$0xff]   ;;  %v3636_v5 = vld [vmem:[#allocation10 + $0x3a8] ss:$12 sps:$4 sm:$0xff]  }
  0x34   :  { %1144 = vmatprep.subr.bf16.mxu0 %v3573_v23  ;;  %1192 = vmatpush1.bf16.msra.mxu1 %v3572_v24  ;;  %v3638_v2 = vld [vmem:[#allocation10 + $0x3ac] ss:$12 sps:$4 sm:$0xff]   ;;  %v3651_v4 = vld [vmem:[#allocation10 + $0x170] ss:$12 sps:$4 sm:$0xff]   ;;  %v3644_v7 = vld [vmem:[#allocation10 + $0x394] ss:$12 sps:$4 sm:$0xff]  }
  0x35   :  { %1193 = vmatprep.subr.bf16.mxu1 %v3576_v25  ;;  %v4166_v6 = vld [vmem:[#allocation7 + $0x8] ss:$24 sps:$4 sm:$0xff]   ;;  %v3652_v8 = vld [vmem:[#allocation10 + $0xb0] ss:$12 sps:$4 sm:$0xff]   ;;  %v3666_v20 = vld [vmem:[#allocation10 + $0x128] ss:$12 sps:$4 sm:$0xff]  }
  0x36   :  { %v3656_v9 = vld [vmem:[#allocation10 + $0x158] ss:$12 sps:$4 sm:$0xff]   ;;  %v3642_v10 = vld [vmem:[#allocation10 + $0x390] ss:$12 sps:$4 sm:$0xff]   ;;  %v3661_v13 = vld [vmem:[#allocation10 + $0x140] ss:$12 sps:$4 sm:$0xff]  }
  0x37   :  { %1145 = vmatpush1.bf16.msra.mxu0 %v3575_v26  ;;  %v3647_v11 = vld [vmem:[#allocation10 + $0x37c] ss:$12 sps:$4 sm:$0xff]   ;;  %v3657_v12 = vld [vmem:[#allocation10 + $0x98] ss:$12 sps:$4 sm:$0xff]   ;;  %v102_v14 = vld [vmem:[#allocation7 + $0x38] sm:$0xff]  ;;  %s4104_s0 = smov [#allocation2]  }
  0x38   :  { %1146 = vmatprep.subr.bf16.mxu0 %v3579_v27  ;;  %1194 = vmatpush1.bf16.msra.mxu1 %v3578_v28  ;;  %v3645_v15 = vld [vmem:[#allocation10 + $0x378] ss:$12 sps:$4 sm:$0xff]   ;;  %v4170_v16 = vcombine.high %v102_v14, %v102_v14  ;;  %v4172_v18 = vcombine.low %v102_v14, %v102_v14  ;;  %v3662_v19 = vld [vmem:[#allocation10 + $0x80] ss:$12 sps:$4 sm:$0xff]   ;;  %v3667_v23 = vld [vmem:[#allocation10 + $0x68] ss:$12 sps:$4 sm:$0xff]  }
  0x39   :  { %1195 = vmatprep.subr.bf16.mxu1 %v3582_v29  ;;  %v3650_v17 = vld [vmem:[#allocation10 + $0x364] ss:$12 sps:$4 sm:$0xff]   ;;  %v3648_v21 = vld [vmem:[#allocation10 + $0x360] ss:$12 sps:$4 sm:$0xff]   ;;  %v3653_v25 = vld [vmem:[#allocation10 + $0x348] ss:$12 sps:$4 sm:$0xff]  }
  0x3a   :  { %v3655_v22 = vld [vmem:[#allocation10 + $0x34c] ss:$12 sps:$4 sm:$0xff]   ;;  %v3671_v24 = vld [vmem:[#allocation10 + $0x110] ss:$12 sps:$4 sm:$0xff]   ;;  %v3660_v26 = vld [vmem:[#allocation10 + $0x334] ss:$12 sps:$4 sm:$0xff]  }
  0x3b   :  { %1147 = vmatpush1.bf16.msra.mxu0 %v3581_v30  ;;  %v3672_v27 = vld [vmem:[#allocation10 + $0x50] ss:$12 sps:$4 sm:$0xff]   ;;  %v101_v28 = vld [vmem:[#allocation7 + $0x30] sm:$0xff]  ;;  %v3676_v29 = vld [vmem:[#allocation10 + $0xf8] ss:$12 sps:$4 sm:$0xff]   ;;  %s55_s1 = sshll.u32 %s4104_s0, 4  ;;  %s56_s1 = int_to_ptr.vmem [resolvable:$true] %s55_s1 }
  0x3c   :  { %1148 = vmatprep.subr.bf16.mxu0 %v3585_v31  ;;  %1196 = vmatpush1.bf16.msra.mxu1 %v3584_v32  ;;  %v3014_v30 = vcombine.high %v101_v28, %v101_v28  ;;  %v3013_v31 = vcombine.low %v101_v28, %v101_v28  ;;  %v3658_v32 = vld [vmem:[#allocation10 + $0x330] ss:$12 sps:$4 sm:$0xff]   ;;  %v3716_v14 = vld [vmem:[#allocation7 + $0x10] ss:$24 sps:$4 sm:$0xff]   ;;  %s4105_s15 = smov [#allocation3]   ;;  %s3992_s17 = scalar_lea.vmem %s56_s1, 10240 }
  0x3d   :  { %1197 = vmatprep.subr.bf16.mxu1 %v3588_v33  ;;  %v3665_v33 = vld [vmem:[#allocation10 + $0x31c] ss:$12 sps:$4 sm:$0xff]   ;;  %v3740_v28 = vld [vmem:[#allocation10 + $0x3e0] ss:$12 sps:$4 sm:$0xff]   ;;  %s67_s16 = sshll.u32 %s4105_s15, 4  ;;  %p3993_p10 = scmp.ne.s32.totalorder %s56_s1, %s3992_s17  ;;  %s68_s16 = int_to_ptr.vmem [resolvable:$true] %s67_s16 }
  0x3e   :  { %p3997_p11 = scmp.lt.s32.totalorder %s56_s1, %s56_s1  ;;  %p3998_p12 = scmp.lt.s32.totalorder %s3992_s17, %s3992_s17 }
  0x3f   :  { %1149 = vmatpush2.bf16.msra.mxu0 %v3587_v34  ;;  %v3677_v34 = vld [vmem:[#allocation10 + $0x38] ss:$12 sps:$4 sm:$0xff]  }
  0x40   :  { %1150 = vmatprep.subr.bf16.mxu0 %v3591_v35  ;;  %1198 = vmatpush2.bf16.msra.mxu1 %v3590_v36  ;;  %v3682_v35 = vld [vmem:[#allocation10 + $0xe0] ss:$12 sps:$4 sm:$0xff]   ;;  %v3663_v36 = vld [vmem:[#allocation10 + $0x318] ss:$12 sps:$4 sm:$0xff]   ;;  %p3999_p13 = por %p3998_p12, %p3997_p11 }
  0x41   :  { %1199 = vmatprep.subr.bf16.mxu1 %v3594_v37  ;;  %v3670_v37 = vld [vmem:[#allocation10 + $0x304] ss:$12 sps:$4 sm:$0xff]  }
  0x42   :  { %p4000_p0 = pnand %p3999_p13, %p3993_p10 }
  0x43   :  { %1151 = vmatpush2.bf16.msra.mxu0 %v3593_v38  ;;  %v3684_v38 = vld [vmem:[#allocation10 + $0x20] ss:$12 sps:$4 sm:$0xff]  }
  0x44   :  { %1152 = vmatprep.subr.bf16.mxu0 %v3597_v39  ;;  %1200 = vmatpush2.bf16.msra.mxu1 %v3596_v40  ;;  %v3688_v39 = vld [vmem:[#allocation10 + $0xc8] ss:$12 sps:$4 sm:$0xff]   ;;  %v3668_v40 = vld [vmem:[#allocation10 + $0x300] ss:$12 sps:$4 sm:$0xff]  }
  0x45   :  { %1201 = vmatprep.subr.bf16.mxu1 %v3600_v41  ;;  %v3675_v41 = vld [vmem:[#allocation10 + $0x46c] ss:$12 sps:$4 sm:$0xff]  }
  0x47   :  { %1153 = vmatpush2.bf16.msra.mxu0 %v3599_v42  ;;  %v3689_v42 = vld [vmem:[#allocation10 + $0x8] ss:$12 sps:$4 sm:$0xff]  }
  0x48   :  { %1154 = vmatprep.subr.bf16.mxu0 %v3603_v43  ;;  %1202 = vmatpush2.bf16.msra.mxu1 %v3602_v44  ;;  %v4177_v43 = vld [vmem:[#allocation7 + $0x14] ss:$24 sps:$4 sm:$0xff]   ;;  %v3693_v44 = vld [vmem:[#allocation10 + $0x2f0] ss:$12 sps:$4 sm:$0xff]  }
  0x49   :  { %1203 = vmatprep.subr.bf16.mxu1 %v3606_v45  ;;  %v3673_v45 = vld [vmem:[#allocation10 + $0x468] ss:$12 sps:$4 sm:$0xff]  }
  0x4b   :  { %1155 = vmatpush2.bf16.msra.mxu0 %v3605_v46  ;;  %v3680_v46 = vld [vmem:[#allocation10 + $0x454] ss:$12 sps:$4 sm:$0xff]  }
  0x4c   :  { %1156 = vmatprep.subr.bf16.mxu0 %v3609_v48  ;;  %1204 = vmatpush2.bf16.msra.mxu1 %v3608_v49  ;;  %v3699_v48 = vld [vmem:[#allocation10 + $0x2d8] ss:$12 sps:$4 sm:$0xff]   ;;  %v3678_v49 = vld [vmem:[#allocation10 + $0x450] ss:$12 sps:$4 sm:$0xff]  }
  0x4d   :  { %1205 = vmatprep.subr.bf16.mxu1 %v3612_v50  ;;  %v3687_v50 = vld [vmem:[#allocation10 + $0x43c] ss:$12 sps:$4 sm:$0xff]  }
  0x4f   :  { %1157 = vmatpush2.bf16.msra.mxu0 %v3611_v52  ;;  %v3701_v52 = vld [vmem:[#allocation10 + $0x218] ss:$12 sps:$4 sm:$0xff]  }
  0x50   :  { %1158 = vmatprep.subr.bf16.mxu0 %v3615_v53  ;;  %1206 = vmatpush2.bf16.msra.mxu1 %v3614_v54  ;;  %v3705_v53 = vld [vmem:[#allocation10 + $0x2c0] ss:$12 sps:$4 sm:$0xff]   ;;  %v3685_v54 = vld [vmem:[#allocation10 + $0x438] ss:$12 sps:$4 sm:$0xff]  }
  0x51   :  { %1207 = vmatprep.subr.bf16.mxu1 %v3618_v55  ;;  %v3692_v55 = vld [vmem:[#allocation10 + $0x424] ss:$12 sps:$4 sm:$0xff]  }
  0x53   :  { %1159 = vmatpush2.bf16.msra.mxu0 %v3617_v56  ;;  %v3706_v56 = vld [vmem:[#allocation10 + $0x200] ss:$12 sps:$4 sm:$0xff]  }
  0x54   :  { %1160 = vmatprep.subr.bf16.mxu0 %v3621_v57  ;;  %1208 = vmatpush2.bf16.msra.mxu1 %v3620_v58  ;;  %v3710_v57 = vld [vmem:[#allocation10 + $0x2a8] ss:$12 sps:$4 sm:$0xff]   ;;  %v3690_v58 = vld [vmem:[#allocation10 + $0x420] ss:$12 sps:$4 sm:$0xff]  }
  0x55   :  { %1209 = vmatprep.subr.bf16.mxu1 %v3624_v59  ;;  %v3697_v59 = vld [vmem:[#allocation10 + $0x40c] ss:$12 sps:$4 sm:$0xff]  }
  0x57   :  { %1161 = vmatpush2.bf16.msra.mxu0 %v3623_v60  ;;  %v3711_v60 = vld [vmem:[#allocation10 + $0x1e8] ss:$12 sps:$4 sm:$0xff]  }
  0x58   :  { %1162 = vmatprep.subr.bf16.mxu0 %v3627_v61  ;;  %1210 = vmatpush2.bf16.msra.mxu1 %v3626_v62  ;;  %v3715_v61 = vld [vmem:[#allocation10 + $0x290] ss:$12 sps:$4 sm:$0xff]   ;;  %v3695_v62 = vld [vmem:[#allocation10 + $0x408] ss:$12 sps:$4 sm:$0xff]  }
  0x59   :  { %1211 = vmatprep.subr.bf16.mxu1 %v3630_v63  ;;  %v3704_v63 = vld [vmem:[#allocation10 + $0x3f4] ss:$12 sps:$4 sm:$0xff]  }
  0x5b   :  { %1163 = vmatpush2.bf16.msra.mxu0 %v3629_v0  ;;  %v3719_v0 = vld [vmem:[#allocation10 + $0x1d0] ss:$12 sps:$4 sm:$0xff]  }
  0x5c   :  { %1230 = vmatprep.subr.bf16.mxu0 %v3638_v2  ;;  %1212 = vmatpush2.bf16.msra.mxu1 %v3635_v3  ;;  %v3702_v2 = vld [vmem:[#allocation10 + $0x3f0] ss:$12 sps:$4 sm:$0xff]  }
  0x5d   :  { %3315 = vmatprep.subr.bf16.mxu1 %v3651_v4  ;;  %v3709_v3 = vld [vmem:[#allocation10 + $0x3dc] ss:$12 sps:$4 sm:$0xff]   ;;  %v3723_v4 = vld [vmem:[#allocation10 + $0x1b8] ss:$12 sps:$4 sm:$0xff]  }
  0x5e   :  { %1165 = vmatmul.mubr.bf16.vlgmr.msra.gmra.mxu0 %v4164_v1 }
  0x5f   :  { %1231 = vmatpush1.bf16.msra.mxu0 %v3636_v5  ;;  %1214 = vmatmul.mubr.bf16.vlgmr.msra.gmra.mxu1 %v4166_v6  ;;  %v3726_v5 = vld [vmem:[#allocation10 + $0x260] ss:$12 sps:$4 sm:$0xff]  }
  0x60   :  { %1232 = vmatprep.subr.bf16.mxu0 %v3644_v7  ;;  %3316 = vmatpush3.bf16.msra.mxu1 %v3652_v8  ;;  %v3714_v7 = vld [vmem:[#allocation10 + $0x3c4] ss:$12 sps:$4 sm:$0xff]   ;;  %v3727_v8 = vld [vmem:[#allocation10 + $0x1a0] ss:$12 sps:$4 sm:$0xff]  }
  0x61   :  { %3317 = vmatprep.subr.bf16.mxu1 %v3656_v9  ;;  %1223 = vmatprep.mubr.bf16.mxu1 %v4170_v16  ;;  %v3730_v9 = vld [vmem:[#allocation10 + $0x248] ss:$12 sps:$4 sm:$0xff]  }
  0x62   :  { %1174 = vmatprep.mubr.bf16.mxu0 %v3014_v30 }
  0x63   :  { %1233 = vmatpush1.bf16.msra.mxu0 %v3642_v10  ;;  %v3712_v10 = vld [vmem:[#allocation10 + $0x3c0] ss:$12 sps:$4 sm:$0xff]  }
  0x64   :  { %1234 = vmatprep.subr.bf16.mxu0 %v3647_v11  ;;  %3318 = vmatpush3.bf16.msra.mxu1 %v3657_v12  ;;  %v3720_v11 = vld [vmem:[#allocation10 + $0x470] ss:$12 sps:$4 sm:$0xff]  }
  0x65   :  { %3319 = vmatprep.subr.bf16.mxu1 %v3661_v13  ;;  %v103_v12 = vld [vmem:[#allocation7 + $0x40] sm:$0xff]  ;;  %v3731_v13 = vld [vmem:[#allocation10 + $0x188] ss:$12 sps:$4 sm:$0xff]  }
  0x66   :  { %1175 = vmatmul.mubr.bf16.gmra.mxu0 %v3013_v31 }
  0x67   :  { %1235 = vmatpush1.bf16.msra.mxu0 %v3645_v15  ;;  %1224 = vmatmul.mubr.bf16.gmra.mxu1 %v4172_v18  ;;  %v3721_v15 = vld [vmem:[#allocation10 + $0x3b0] ss:$12 sps:$4 sm:$0xff]  }
  0x68   :  { %1236 = vmatprep.subr.bf16.mxu0 %v3650_v17  ;;  %3320 = vmatpush3.bf16.msra.mxu1 %v3662_v19  ;;  %v3018_v17 = vcombine.high %v103_v12, %v103_v12  ;;  %v3724_v19 = vld [vmem:[#allocation10 + $0x458] ss:$12 sps:$4 sm:$0xff]  }
  0x69   :  { %1311 = vmatprep.mubr.bf16.mxu1 %v4158_v47  ;;  %3321 = vmatprep.subr.bf16.mxu1 %v3666_v20  ;;  %v3694_v47 = vld [vmem:[#allocation10 + $0x230] ss:$12 sps:$4 sm:$0xff]   ;;  %v3725_v20 = vld [vmem:[#allocation10 + $0x398] ss:$12 sps:$4 sm:$0xff]  }
  0x6a   :  { %1262 = vmatprep.mubr.bf16.mxu0 %v4177_v43 }
  0x6b   :  { %1237 = vmatpush1.bf16.msra.mxu0 %v3648_v21  ;;  %v3728_v21 = vld [vmem:[#allocation10 + $0x440] ss:$12 sps:$4 sm:$0xff]  }
  0x6c   :  { %1238 = vmatprep.subr.bf16.mxu0 %v3655_v22  ;;  %3322 = vmatpush3.bf16.msra.mxu1 %v3667_v23  ;;  %v3017_v22 = vcombine.low %v103_v12, %v103_v12  ;;  %v3729_v23 = vld [vmem:[#allocation10 + $0x380] ss:$12 sps:$4 sm:$0xff]  }
  0x6d   :  { %3323 = vmatprep.subr.bf16.mxu1 %v3671_v24  ;;  %v3732_v24 = vld [vmem:[#allocation10 + $0x428] ss:$12 sps:$4 sm:$0xff]  }
  0x6f   :  { %1239 = vmatpush1.bf16.msra.mxu0 %v3653_v25  ;;  %v3733_v25 = vld [vmem:[#allocation10 + $0x368] ss:$12 sps:$4 sm:$0xff]  }
  0x70   :  { %1240 = vmatprep.subr.bf16.mxu0 %v3660_v26  ;;  %3324 = vmatpush3.bf16.msra.mxu1 %v3672_v27  ;;  %v3734_v26 = vld [vmem:[#allocation10 + $0x410] ss:$12 sps:$4 sm:$0xff]  }
  0x71   :  { %3325 = vmatprep.subr.bf16.mxu1 %v3676_v29  ;;  %v3736_v27 = vld [vmem:[#allocation10 + $0x350] ss:$12 sps:$4 sm:$0xff]   ;;  %v3741_v29 = vld [vmem:[#allocation10 + $0x320] ss:$12 sps:$4 sm:$0xff]  }
  0x73   :  { %1241 = vmatpush1.bf16.msra.mxu0 %v3658_v32 }
  0x74   :  { %1242 = vmatprep.subr.bf16.mxu0 %v3665_v33  ;;  %3326 = vmatpush3.bf16.msra.mxu1 %v3677_v34 }
  0x75   :  { %3327 = vmatprep.subr.bf16.mxu1 %v3682_v35 }
  0x77   :  { %1243 = vmatpush1.bf16.msra.mxu0 %v3663_v36 }
  0x78   :  { %1244 = vmatprep.subr.bf16.mxu0 %v3670_v37  ;;  %3328 = vmatpush3.bf16.msra.mxu1 %v3684_v38 }
  0x79   :  { %3329 = vmatprep.subr.bf16.mxu1 %v3688_v39 }
  0x7b   :  { %1245 = vmatpush1.bf16.msra.mxu0 %v3668_v40 }
  0x7c   :  { %1246 = vmatprep.subr.bf16.mxu0 %v3675_v41  ;;  %3330 = vmatpush3.bf16.msra.mxu1 %v3689_v42 }
  0x7d   :  { %3343 = vmatprep.subr.bf16.mxu1 %v3693_v44 }
  0x7f   :  { %1247 = vmatpush2.bf16.msra.mxu0 %v3673_v45  ;;  %1312 = vmatmul.mubr.bf16.vlgmr.msra.gmra.mxu1 %v4164_v1  ;;  %v3722_v1 = vld [vmem:[#allocation10 + $0x278] ss:$12 sps:$4 sm:$0xff]  }
  0x80   :  { %1248 = vmatprep.subr.bf16.mxu0 %v3680_v46  ;;  %3344 = vmatpush3.bf16.msra.mxu1 %v3694_v47 }
  0x81   :  { %1317 = vmatprep.mubr.bf16.mxu1 %v3014_v30  ;;  %3345 = vmatprep.subr.bf16.mxu1 %v3699_v48  ;;  %v3742_v30 = vld [vmem:[#allocation10 + $0x3c8] ss:$12 sps:$4 sm:$0xff]  }
  0x83   :  { %1249 = vmatpush2.bf16.msra.mxu0 %v3678_v49 }
  0x84   :  { %1250 = vmatprep.subr.bf16.mxu0 %v3687_v50  ;;  %3346 = vmatpush3.bf16.msra.mxu1 %v3701_v52 }
  0x85   :  { %3347 = vmatprep.subr.bf16.mxu1 %v3705_v53 }
  0x87   :  { %1251 = vmatpush2.bf16.msra.mxu0 %v3685_v54  ;;  %1318 = vmatmul.mubr.bf16.gmra.mxu1 %v3013_v31  ;;  %v3743_v31 = vld [vmem:[#allocation10 + $0x308] ss:$12 sps:$4 sm:$0xff]  }
  0x88   :  { %1252 = vmatprep.subr.bf16.mxu0 %v3692_v55  ;;  %3348 = vmatpush3.bf16.msra.mxu1 %v3706_v56 }
  0x89   :  { %1357 = vmatprep.mubr.bf16.mxu1 %v4161_v51  ;;  %3349 = vmatprep.subr.bf16.mxu1 %v3710_v57  ;;  %v3707_v51 = vld [vmem:[#allocation10 + $0x3d8] ss:$12 sps:$4 sm:$0xff]  }
  0x8b   :  { %1253 = vmatpush2.bf16.msra.mxu0 %v3690_v58 }
  0x8c   :  { %1254 = vmatprep.subr.bf16.mxu0 %v3697_v59  ;;  %3350 = vmatpush3.bf16.msra.mxu1 %v3711_v60 }
  0x8d   :  { %3351 = vmatprep.subr.bf16.mxu1 %v3715_v61 }
  0x8f   :  { %1255 = vmatpush2.bf16.msra.mxu0 %v3695_v62 }
  0x90   :  { %1256 = vmatprep.subr.bf16.mxu0 %v3704_v63  ;;  %3352 = vmatpush3.bf16.msra.mxu1 %v3719_v0 }
  0x91   :  { %3353 = vmatprep.subr.bf16.mxu1 %v3722_v1 }
  0x93   :  { %1257 = vmatpush2.bf16.msra.mxu0 %v3702_v2 }
  0x94   :  { %1258 = vmatprep.subr.bf16.mxu0 %v3709_v3  ;;  %3354 = vmatpush3.bf16.msra.mxu1 %v3723_v4 }
  0x95   :  { %3355 = vmatprep.subr.bf16.mxu1 %v3726_v5 }
  0x97   :  { %1259 = vmatpush2.bf16.msra.mxu0 %v3707_v51 }
  0x98   :  { %1260 = vmatprep.subr.bf16.mxu0 %v3714_v7  ;;  %3356 = vmatpush3.bf16.msra.mxu1 %v3727_v8 }
  0x99   :  { %3357 = vmatprep.subr.bf16.mxu1 %v3730_v9 }
  0x9b   :  { %1261 = vmatpush2.bf16.msra.mxu0 %v3712_v10 }
  0x9c   :  { %3371 = vmatprep.subr.bf16.mxu0 %v3720_v11  ;;  %3358 = vmatpush3.bf16.msra.mxu1 %v3731_v13 }
  0x9e   :  { %1263 = vmatmul.mubr.bf16.vlgmr.msra.gmra.mxu0 %v3716_v14 }
  0x9f   :  { %3372 = vmatpush3.bf16.msra.mxu0 %v3721_v15  ;;  %1272 = vmatprep.mubr.bf16.mxu0 %v3018_v17 }
  0xa0   :  { %3373 = vmatprep.subr.bf16.mxu0 %v3724_v19  ;;  %1358 = vmatmul.mubr.bf16.vlgmr.msra.gmra.mxu1 %v4166_v6  ;;  %v3738_v6 = vld [vmem:[#allocation10 + $0x3f8] ss:$12 sps:$4 sm:$0xff]  }
  0xa1   :  { %1363 = vmatprep.mubr.bf16.mxu1 %v4170_v16  ;;  %v3739_v16 = vld [vmem:[#allocation10 + $0x338] ss:$12 sps:$4 sm:$0xff]  }
  0xa3   :  { %3374 = vmatpush3.bf16.msra.mxu0 %v3725_v20 }
  0xa4   :  { %3375 = vmatprep.subr.bf16.mxu0 %v3728_v21 }
  0xa6   :  { %1273 = vmatmul.mubr.bf16.gmra.mxu0 %v3017_v22 }
  0xa7   :  { %3376 = vmatpush3.bf16.msra.mxu0 %v3729_v23  ;;  %1403 = vmatprep.mubr.bf16.mxu0 %v4177_v43 }
  0xa8   :  { %3377 = vmatprep.subr.bf16.mxu0 %v3732_v24  ;;  %1364 = vmatmul.mubr.bf16.gmra.mxu1 %v4172_v18 }
  0xab   :  { %3378 = vmatpush3.bf16.msra.mxu0 %v3733_v25 }
  0xac   :  { %3379 = vmatprep.subr.bf16.mxu0 %v3734_v26 }
  0xaf   :  { %3380 = vmatpush3.bf16.msra.mxu0 %v3736_v27 }
  0xb0   :  { %3381 = vmatprep.subr.bf16.mxu0 %v3738_v6 }
  0xb3   :  { %3382 = vmatpush3.bf16.msra.mxu0 %v3739_v16 }
  0xb4   :  { %3383 = vmatprep.subr.bf16.mxu0 %v3740_v28 }
  0xb7   :  { %3384 = vmatpush3.bf16.msra.mxu0 %v3741_v29 }
  0xb8   :  { %3385 = vmatprep.subr.bf16.mxu0 %v3742_v30 }
  0xbb   :  { %3386 = vmatpush3.bf16.msra.mxu0 %v3743_v31 }
  0xbe   :  { %1404 = vmatmul.mubr.bf16.vlgmr.msra.gmra.mxu0 %v3716_v14 }
  0xbf   :  { %1409 = vmatprep.mubr.bf16.mxu0 %v3018_v17 }
  0xc6   :  { %1410 = vmatmul.mubr.bf16.gmra.mxu0 %v3017_v22 }
  0xc7   :  { %4003 = shalt.err (!%p4000_p0)  }
  0xc8   :  { %58 = dma.hbm_to_vmem [thread:$0]  %s4292_s3, 10240, %s56_s1, [#allocation6] }
  0xc9   :  { %s4012_s20 = scalar_lea.vmem %s68_s16, 6144  ;;  %p4017_p2 = scmp.lt.s32.totalorder %s68_s16, %s68_s16 }
  0xca   :  { %p4013_p1 = scmp.ne.s32.totalorder %s68_s16, %s4012_s20  ;;  %p4018_p3 = scmp.lt.s32.totalorder %s4012_s20, %s4012_s20 }
  0xcc   :  { %p4019_p4 = por %p4018_p3, %p4017_p2 }
  0xce   :  { %p4020_p5 = pnand %p4019_p4, %p4013_p1 }
  0xd0   :  { %4023 = shalt.err (!%p4020_p5)  }
  0xd1   :  { %70 = dma.hbm_to_vmem [thread:$0]  %s4293_s4, 6144, %s68_s16, [#allocation6 + $0x1]  ;;  %v298_v18 = vlaneseq }
  0xd2   :  { %s4106_s23 = smov [#allocation4]   ;;  %s4107_s25 = smov [#allocation5]  }
  0xd3   :  { %s79_s24 = sshll.u32 %s4106_s23, 4  ;;  %s91_s26 = sshll.u32 %s4107_s25, 4  ;;  %s80_s24 = int_to_ptr.vmem [resolvable:$true] %s79_s24  ;;  %s92_s26 = int_to_ptr.vmem [resolvable:$true] %s91_s26 }
  0xd4   :  { %s4032_s27 = scalar_lea.vmem %s80_s24, 2048  ;;  %p4037_p7 = scmp.lt.s32.totalorder %s80_s24, %s80_s24 }
  0xd5   :  { %p4033_p6 = scmp.ne.s32.totalorder %s80_s24, %s4032_s27  ;;  %p4038_p8 = scmp.lt.s32.totalorder %s4032_s27, %s4032_s27 }
  0xd7   :  { %p4039_p9 = por %p4038_p8, %p4037_p7 }
  0xd9   :  { %p4040_p10 = pnand %p4039_p9, %p4033_p6 }
  0xdb   :  { %4043 = shalt.err (!%p4040_p10)  }
  0xdc   :  { %82 = dma.hbm_to_vmem [thread:$0]  %s4294_s5, 2048, %s80_s24, [#allocation6 + $0x2] }
  0xdd   :  { %s4052_s29 = scalar_lea.vmem %s92_s26, 256  ;;  %p4057_p12 = scmp.lt.s32.totalorder %s92_s26, %s92_s26 }
  0xde   :  { %p4053_p11 = scmp.ne.s32.totalorder %s92_s26, %s4052_s29  ;;  %p4058_p13 = scmp.lt.s32.totalorder %s4052_s29, %s4052_s29 }
  0xe0   :  { %p4059_p0 = por %p4058_p13, %p4057_p12 }
  0xe2   :  { %p4060_p1 = pnand %p4059_p0, %p4053_p11 }
  0xe4   :  { %4063 = shalt.err (!%p4060_p1)  }
  0xe5   :  { %94 = dma.hbm_to_vmem [thread:$0]  %s4295_s6, 256, %s92_s26, [#allocation6 + $0x3]  ;;  %v4198_v32 = vshrl.u32 %v298_v18, 7  ;;  %v4206_v34 = vld [vmem:[%s4291_s2] sm:$0x7] }
  0xe7   :  { %v4201_v33 = vsub.s32 0, %v4198_v32  ;;  %v4209_v35 = vsub.s32 1, %v4198_v32  ;;  %v308_v31 = vsub.s32 2, %v4198_v32 }
  0xe9   :  { %v301_v36 = vrot.slane %v4206_v34, %v4201_v33  ;;  %v305_v37 = vrot.slane %v4206_v34, %v4209_v35 }
 0x11e   :  { %v1166_v38 = vpop.f32.mrf.mxu0 }
 0x11f   :  { %v1167_v39 = vadd.f32 %v1166_v38, %v301_v36  ;;  %v1215_v41 = vpop.f32.mrf.mxu1 }
 0x120   :  { %v1168_v40 = vpop.f32.mrf.mxu0 }
 0x121   :  { %v1169_v42 = vadd.f32 %v1168_v40, %v305_v37  ;;  %v1216_v43 = vadd.f32 %v1215_v41, %v1167_v39  ;;  %v1217_v45 = vpop.f32.mrf.mxu1 }
 0x122   :  { %v1170_v44 = vpop.f32.mrf.mxu0 }
 0x123   :  { %v1171_v46 = vadd.f32 %v1170_v44, %v301_v36  ;;  %v1218_v47 = vadd.f32 %v1217_v45, %v1169_v42  ;;  %v1219_v49 = vpop.f32.mrf.mxu1 }
 0x124   :  { %v1172_v48 = vpop.f32.mrf.mxu0 }
 0x125   :  { %v1173_v50 = vadd.f32 %v1172_v48, %v305_v37  ;;  %v1220_v52 = vadd.f32 %v1219_v49, %v1171_v46  ;;  %v1221_v53 = vpop.f32.mrf.mxu1  ;;  %v309_v37 = vrot.slane %v4206_v34, %v308_v31 }
 0x126   :  { %v1176_v59 = vpop.f32.mrf.mxu0 }
 0x127   :  { %v1222_v54 = vadd.f32 %v1221_v53, %v1173_v50  ;;  %v1225_v55 = vpop.f32.mrf.mxu1 }
 0x128   :  { %v1177_v60 = vpop.f32.mrf.mxu0 }
 0x129   :  { %v1226_v56 = vpop.f32.mrf.mxu1 }
 0x12a   :  { %v1178_v61 = vpop.f32.mrf.mxu0 }
 0x12b   :  { %v1227_v57 = vpop.f32.mrf.mxu1 }
 0x12c   :  { %v1179_v62 = vpop.f32.mrf.mxu0 }
 0x12d   :  { %v1228_v58 = vpop.f32.mrf.mxu1 }
 0x13f   :  { %v3331_v63 = vpop.f32.mrf.mxu1 }
 0x141   :  { %v3332_v0 = vpop.f32.mrf.mxu1 }
 0x143   :  { %v3334_v1 = vpop.f32.mrf.mxu1 }
 0x145   :  { %v3335_v2 = vpop.f32.mrf.mxu1 }
 0x147   :  { %v3337_v3 = vpop.f32.mrf.mxu1 }
 0x149   :  { %v3338_v4 = vpop.f32.mrf.mxu1 }
 0x14a   :  { %v3339_v38 = vadd.f32 %v3338_v4, %v3337_v3 }
 0x14b   :  { %v3340_v5 = vpop.f32.mrf.mxu1 }
 0x14c   :  { %v1320_v41 = vadd.f32 %v3339_v38, %v309_v37 }
 0x14d   :  { %v3341_v51 = vpop.f32.mrf.mxu1 }
 0x15e   :  { %v1264_v7 = vpop.f32.mrf.mxu0 }
 0x15f   :  { %v4215_v8 = vadd.f32 %v1264_v7, %v1216_v43 }
 0x160   :  { %v1266_v9 = vpop.f32.mrf.mxu0  ;;  %v3359_v10 = vpop.f32.mrf.mxu1 }
 0x161   :  { %v1417_v11 = vmax.f32 %v4215_v8, 0.0  ;;  %v4218_v12 = vadd.f32 %v1266_v9, %v1218_v47 }
 0x162   :  { %v1268_v13 = vpop.f32.mrf.mxu0  ;;  %v3360_v14 = vpop.f32.mrf.mxu1 }
 0x163   :  { %v1418_v15 = vmax.f32 %v4218_v12, 0.0  ;;  %v4221_v17 = vadd.f32 %v1268_v13, %v1220_v52 }
 0x164   :  { %v1270_v19 = vpop.f32.mrf.mxu0  ;;  %v3362_v20 = vpop.f32.mrf.mxu1 }
 0x165   :  { %v1419_v21 = vmax.f32 %v4221_v17, 0.0  ;;  %v4224_v22 = vadd.f32 %v1270_v19, %v1222_v54 }
 0x166   :  { %v1274_v23 = vpop.f32.mrf.mxu0  ;;  %v3363_v24 = vpop.f32.mrf.mxu1 }
 0x167   :  { %v1420_v25 = vmax.f32 %v4224_v22, 0.0 }
 0x168   :  { %v1275_v26 = vpop.f32.mrf.mxu0  ;;  %v3365_v27 = vpop.f32.mrf.mxu1 }
 0x16a   :  { %v1276_v6 = vpop.f32.mrf.mxu0  ;;  %v3366_v16 = vpop.f32.mrf.mxu1 }
 0x16b   :  { %v3367_v42 = vadd.f32 %v3366_v16, %v3365_v27 }
 0x16c   :  { %v1277_v28 = vpop.f32.mrf.mxu0  ;;  %v3368_v29 = vpop.f32.mrf.mxu1 }
 0x16d   :  { %v1366_v45 = vadd.f32 %v3367_v42, %v1320_v41 }
 0x16e   :  { %v3369_v30 = vpop.f32.mrf.mxu1 }
 0x17e   :  { %v3387_v18 = vpop.f32.mrf.mxu0 }
 0x180   :  { %v3388_v36 = vpop.f32.mrf.mxu0 }
 0x182   :  { %v3390_v39 = vpop.f32.mrf.mxu0 }
 0x184   :  { %v3391_v40 = vpop.f32.mrf.mxu0 }
 0x186   :  { %v3393_v43 = vpop.f32.mrf.mxu0 }
 0x188   :  { %v3394_v44 = vpop.f32.mrf.mxu0 }
 0x189   :  { %v3395_v46 = vadd.f32 %v3394_v44, %v3393_v43 }
 0x18a   :  { %v3396_v47 = vpop.f32.mrf.mxu0 }
 0x18b   :  { %v4229_v48 = vadd.f32 %v3395_v46, %v1366_v45 }
 0x18c   :  { %v3397_v49 = vpop.f32.mrf.mxu0 }
 0x18d   :  { %v1421_v50 = vmax.f32 %v4229_v48, 0.0 }
 0x18e   :  { %4088 = dma.done.wait [#allocation6], 10240 }
 0x18f   :  { %4089 = vsyncadd [#allocation6], 4294957056 }
 0x190   :  { %4090 = dma.done.wait [#allocation6 + $0x1], 6144 }
 0x191   :  { %4091 = vsyncadd [#allocation6 + $0x1], 4294961152 }
 0x192   :  { %4092 = dma.done.wait [#allocation6 + $0x2], 2048 }
 0x193   :  { %4093 = vsyncadd [#allocation6 + $0x2], 4294965248 }
 0x194   :  { %4094 = dma.done.wait [#allocation6 + $0x3], 256 }
 0x195   :  { %4095 = vsyncadd [#allocation6 + $0x3], 4294967040  ;;  %v4108_v32 = vmov 0   ;;  %v3744_v34 = vld [vmem:[#allocation2 + $0x74] ss:$8 sps:$4 sm:$0xff]   ;;  %v1457_v29 = vpack.c.bf16 %v1421_v50, %v1421_v50  ;;  %v1610_v30 = vpack.c.bf16 %v1417_v11, %v1417_v11  ;;  %vm4110_vm0 = vmmov 0  }
 0x196   :  { %1582 = vmatprep.mubr.bf16.mxu1 %v4108_v32  ;;  %1736 = vmatprep.mubr.bf16.mxu0 %v4108_v32  ;;  %v3746_v52 = vld [vmem:[#allocation2 + $0xf4] ss:$8 sps:$4 sm:$0xff]   ;;  %v3748_v53 = vld [vmem:[#allocation2 + $0x70] ss:$8 sps:$4 sm:$0xff]   ;;  %v3750_v55 = vld [vmem:[#allocation2 + $0x64] ss:$8 sps:$4 sm:$0xff]  }
 0x197   :  { %1550 = vmatprep.subr.bf16.mxu1 %v3744_v34  ;;  %v3749_v54 = vld [vmem:[#allocation2 + $0xf0] ss:$8 sps:$4 sm:$0xff]   ;;  %1704 = vmatprep.subr.bf16.mxu0 %v3746_v52  ;;  %v3752_v56 = vld [vmem:[#allocation2 + $0xe4] ss:$8 sps:$4 sm:$0xff]   ;;  %v3754_v57 = vld [vmem:[#allocation2 + $0x60] ss:$8 sps:$4 sm:$0xff]  }
 0x198   :  { %1551 = vmatpush1.bf16.msra.mxu1 %v3748_v53  ;;  %1705 = vmatpush1.bf16.msra.mxu0 %v3749_v54  ;;  %v3755_v58 = vld [vmem:[#allocation2 + $0xe0] ss:$8 sps:$4 sm:$0xff]   ;;  %v3756_v59 = vld [vmem:[#allocation2 + $0x54] ss:$8 sps:$4 sm:$0xff]   ;;  %v3760_v61 = vld [vmem:[#allocation2 + $0x50] ss:$8 sps:$4 sm:$0xff]  }
 0x199   :  { %1552 = vmatprep.subr.bf16.mxu1 %v3750_v55  ;;  %1706 = vmatprep.subr.bf16.mxu0 %v3752_v56  ;;  %v3758_v60 = vld [vmem:[#allocation2 + $0xd4] ss:$8 sps:$4 sm:$0xff]   ;;  %v3761_v62 = vld [vmem:[#allocation2 + $0xd0] ss:$8 sps:$4 sm:$0xff]   ;;  %v3762_v63 = vld [vmem:[#allocation2 + $0x44] ss:$8 sps:$4 sm:$0xff]  }
 0x19a   :  { %v3764_v0 = vld [vmem:[#allocation2 + $0xc4] ss:$8 sps:$4 sm:$0xff]   ;;  %v3766_v1 = vld [vmem:[#allocation2 + $0x40] ss:$8 sps:$4 sm:$0xff]   ;;  %v3768_v3 = vld [vmem:[#allocation2 + $0x34] ss:$8 sps:$4 sm:$0xff]  }
 0x19b   :  { %v3767_v2 = vld [vmem:[#allocation2 + $0xc0] ss:$8 sps:$4 sm:$0xff]   ;;  %v3770_v4 = vld [vmem:[#allocation2 + $0xb4] ss:$8 sps:$4 sm:$0xff]   ;;  %v3772_v5 = vld [vmem:[#allocation2 + $0x30] ss:$8 sps:$4 sm:$0xff]  }
 0x19c   :  { %1553 = vmatpush1.bf16.msra.mxu1 %v3754_v57  ;;  %1707 = vmatpush1.bf16.msra.mxu0 %v3755_v58  ;;  %v3773_v51 = vld [vmem:[#allocation2 + $0xb0] ss:$8 sps:$4 sm:$0xff]   ;;  %v3774_v7 = vld [vmem:[#allocation2 + $0x24] ss:$8 sps:$4 sm:$0xff]   ;;  %v3778_v10 = vld [vmem:[#allocation2 + $0x20] ss:$8 sps:$4 sm:$0xff]  }
 0x19d   :  { %1554 = vmatprep.subr.bf16.mxu1 %v3756_v59  ;;  %1708 = vmatprep.subr.bf16.mxu0 %v3758_v60  ;;  %v3776_v9 = vld [vmem:[#allocation2 + $0xa4] ss:$8 sps:$4 sm:$0xff]   ;;  %v3779_v13 = vld [vmem:[#allocation2 + $0xa0] ss:$8 sps:$4 sm:$0xff]   ;;  %v3780_v14 = vld [vmem:[#allocation2 + $0x14] ss:$8 sps:$4 sm:$0xff]  }
 0x19e   :  { %v3782_v19 = vld [vmem:[#allocation2 + $0x94] ss:$8 sps:$4 sm:$0xff]   ;;  %v3784_v20 = vld [vmem:[#allocation2 + $0x10] ss:$8 sps:$4 sm:$0xff]   ;;  %v3786_v24 = vld [vmem:[#allocation2 + $0x4] ss:$8 sps:$4 sm:$0xff]  }
 0x19f   :  { %v3785_v23 = vld [vmem:[#allocation2 + $0x90] ss:$8 sps:$4 sm:$0xff]   ;;  %v3788_v26 = vld [vmem:[#allocation2 + $0x84] ss:$8 sps:$4 sm:$0xff]   ;;  %v3790_v27 = vld [vmem:[#allocation2] ss:$8 sps:$4 sm:$0xff]  }
 0x1a0   :  { %1555 = vmatpush1.bf16.msra.mxu1 %v3760_v61  ;;  %1709 = vmatpush1.bf16.msra.mxu0 %v3761_v62  ;;  %v3791_v6 = vld [vmem:[#allocation2 + $0x80] ss:$8 sps:$4 sm:$0xff]   ;;  %v3794_v16 = vld [vmem:[#allocation2 + $0x174] ss:$8 sps:$4 sm:$0xff]   ;;  %v3792_v31 = vld [vmem:[#allocation2 + $0x170] ss:$8 sps:$4 sm:$0xff]  }
 0x1a1   :  { %1556 = vmatprep.subr.bf16.mxu1 %v3762_v63  ;;  %1710 = vmatprep.subr.bf16.mxu0 %v3764_v0  ;;  %v3797_v28 = vld [vmem:[#allocation2 + $0x1f4] ss:$8 sps:$4 sm:$0xff]   ;;  %v3795_v18 = vld [vmem:[#allocation2 + $0x1f0] ss:$8 sps:$4 sm:$0xff]   ;;  %v3800_v36 = vld [vmem:[#allocation2 + $0x164] ss:$8 sps:$4 sm:$0xff]   ;;  %v1764_v63 = vpack.c.bf16 %v1419_v21, %v1419_v21  ;;  %v1918_v0 = vpack.c.bf16 %v1418_v15, %v1418_v15 }
 0x1a2   :  { %v3803_v37 = vld [vmem:[#allocation2 + $0x1e4] ss:$8 sps:$4 sm:$0xff]   ;;  %v3798_v38 = vld [vmem:[#allocation2 + $0x160] ss:$8 sps:$4 sm:$0xff]   ;;  %v3806_v40 = vld [vmem:[#allocation2 + $0x154] ss:$8 sps:$4 sm:$0xff]  }
 0x1a3   :  { %v3801_v39 = vld [vmem:[#allocation2 + $0x1e0] ss:$8 sps:$4 sm:$0xff]   ;;  %v3809_v8 = vld [vmem:[#allocation2 + $0x1d4] ss:$8 sps:$4 sm:$0xff]   ;;  %v3804_v11 = vld [vmem:[#allocation2 + $0x150] ss:$8 sps:$4 sm:$0xff]  }
 0x1a4   :  { %1557 = vmatpush1.bf16.msra.mxu1 %v3766_v1  ;;  %1711 = vmatpush1.bf16.msra.mxu0 %v3767_v2  ;;  %v3807_v41 = vld [vmem:[#allocation2 + $0x1d0] ss:$8 sps:$4 sm:$0xff]   ;;  %v3812_v42 = vld [vmem:[#allocation2 + $0x144] ss:$8 sps:$4 sm:$0xff]   ;;  %v3810_v44 = vld [vmem:[#allocation2 + $0x140] ss:$8 sps:$4 sm:$0xff]  }
 0x1a5   :  { %1558 = vmatprep.subr.bf16.mxu1 %v3768_v3  ;;  %1712 = vmatprep.subr.bf16.mxu0 %v3770_v4  ;;  %v3815_v43 = vld [vmem:[#allocation2 + $0x1c4] ss:$8 sps:$4 sm:$0xff]   ;;  %v3813_v45 = vld [vmem:[#allocation2 + $0x1c0] ss:$8 sps:$4 sm:$0xff]   ;;  %v3818_v46 = vld [vmem:[#allocation2 + $0x134] ss:$8 sps:$4 sm:$0xff]  }
 0x1a6   :  { %v3821_v47 = vld [vmem:[#allocation2 + $0x1b4] ss:$8 sps:$4 sm:$0xff]   ;;  %v3816_v48 = vld [vmem:[#allocation2 + $0x130] ss:$8 sps:$4 sm:$0xff]   ;;  %v3824_v50 = vld [vmem:[#allocation2 + $0x124] ss:$8 sps:$4 sm:$0xff]  }
 0x1a7   :  { %v3819_v49 = vld [vmem:[#allocation2 + $0x1b0] ss:$8 sps:$4 sm:$0xff]   ;;  %v3827_v34 = vld [vmem:[#allocation2 + $0x1a4] ss:$8 sps:$4 sm:$0xff]   ;;  %v3822_v52 = vld [vmem:[#allocation2 + $0x120] ss:$8 sps:$4 sm:$0xff]  }
 0x1a8   :  { %1559 = vmatpush1.bf16.msra.mxu1 %v3772_v5  ;;  %1713 = vmatpush1.bf16.msra.mxu0 %v3773_v51  ;;  %v3825_v53 = vld [vmem:[#allocation2 + $0x1a0] ss:$8 sps:$4 sm:$0xff]   ;;  %v3830_v54 = vld [vmem:[#allocation2 + $0x114] ss:$8 sps:$4 sm:$0xff]   ;;  %v3828_v56 = vld [vmem:[#allocation2 + $0x110] ss:$8 sps:$4 sm:$0xff]  }
 0x1a9   :  { %1560 = vmatprep.subr.bf16.mxu1 %v3774_v7  ;;  %1714 = vmatprep.subr.bf16.mxu0 %v3776_v9  ;;  %v3833_v55 = vld [vmem:[#allocation2 + $0x194] ss:$8 sps:$4 sm:$0xff]   ;;  %v3831_v57 = vld [vmem:[#allocation2 + $0x190] ss:$8 sps:$4 sm:$0xff]   ;;  %v3836_v58 = vld [vmem:[#allocation2 + $0x104] ss:$8 sps:$4 sm:$0xff]  }
 0x1aa   :  { %v3839_v59 = vld [vmem:[#allocation2 + $0x184] ss:$8 sps:$4 sm:$0xff]   ;;  %v3834_v60 = vld [vmem:[#allocation2 + $0x100] ss:$8 sps:$4 sm:$0xff]   ;;  %v3842_v62 = vld [vmem:[#allocation2 + $0x274] ss:$8 sps:$4 sm:$0xff]  }
 0x1ab   :  { %v3837_v61 = vld [vmem:[#allocation2 + $0x180] ss:$8 sps:$4 sm:$0xff]   ;;  %v3840_v1 = vld [vmem:[#allocation2 + $0x270] ss:$8 sps:$4 sm:$0xff]   ;;  %v3845_v2 = vld [vmem:[#allocation2 + $0x264] ss:$8 sps:$4 sm:$0xff]  }
 0x1ac   :  { %1561 = vmatpush1.bf16.msra.mxu1 %v3778_v10  ;;  %1715 = vmatpush1.bf16.msra.mxu0 %v3779_v13  ;;  %v3843_v3 = vld [vmem:[#allocation2 + $0x260] ss:$8 sps:$4 sm:$0xff]   ;;  %v3848_v4 = vld [vmem:[#allocation2 + $0x254] ss:$8 sps:$4 sm:$0xff]   ;;  %v3846_v17 = vld [vmem:[#allocation2 + $0x250] ss:$8 sps:$4 sm:$0xff]  }
 0x1ad   :  { %1562 = vmatprep.subr.bf16.mxu1 %v3780_v14  ;;  %1716 = vmatprep.subr.bf16.mxu0 %v3782_v19  ;;  %v3851_v5 = vld [vmem:[#allocation2 + $0x244] ss:$8 sps:$4 sm:$0xff]   ;;  %v3849_v12 = vld [vmem:[#allocation2 + $0x240] ss:$8 sps:$4 sm:$0xff]   ;;  %v3854_v21 = vld [vmem:[#allocation2 + $0x234] ss:$8 sps:$4 sm:$0xff]  }
 0x1ae   :  { %v3852_v15 = vld [vmem:[#allocation2 + $0x230] ss:$8 sps:$4 sm:$0xff]   ;;  %v3857_v51 = vld [vmem:[#allocation2 + $0x224] ss:$8 sps:$4 sm:$0xff]   ;;  %v3855_v7 = vld [vmem:[#allocation2 + $0x220] ss:$8 sps:$4 sm:$0xff]  }
 0x1af   :  { %v3860_v9 = vld [vmem:[#allocation2 + $0x214] ss:$8 sps:$4 sm:$0xff]   ;;  %v3858_v10 = vld [vmem:[#allocation2 + $0x210] ss:$8 sps:$4 sm:$0xff]   ;;  %v3863_v13 = vld [vmem:[#allocation2 + $0x204] ss:$8 sps:$4 sm:$0xff]  }
 0x1b0   :  { %1563 = vmatpush1.bf16.msra.mxu1 %v3784_v20  ;;  %1717 = vmatpush1.bf16.msra.mxu0 %v3785_v23  ;;  %v3864_v14 = vld [vmem:[#allocation3 + $0x78] sm:$0xff]   ;;  %v2082_v20 = vpack.c.bf16 %v1420_v25, %v1420_v25  ;;  %v3866_v23 = vld [vmem:[#allocation3 + $0x70] sm:$0xff]   ;;  %s4111_s2 = smov [#allocation12]  }
 0x1b1   :  { %1564 = vmatprep.subr.bf16.mxu1 %v3786_v24  ;;  %1718 = vmatprep.subr.bf16.mxu0 %v3788_v26  ;;  %v3865_v19 = vld [vmem:[#allocation3 + $0x38] sm:$0xff]   ;;  %v3867_v24 = vld [vmem:[#allocation3 + $0x30] sm:$0xff]   ;;  %v3868_v26 = vld [vmem:[#allocation3 + $0x68] sm:$0xff]   ;;  %s2970_s5 = sshll.u32 %s4111_s2, 4  ;;  %s2971_s5 = int_to_ptr.vmem [resolvable:$true] %s2970_s5 }
 0x1b2   :  { %v3873_v22 = vld [vmem:[#allocation3 + $0x18] sm:$0xff]   ;;  %v3874_v25 = vld [vmem:[#allocation3 + $0x50] sm:$0xff]   ;;  %s4064_s6 = scalar_lea.vmem %s2971_s5, 128  ;;  %p4069_p3 = scmp.lt.s32.totalorder %s2971_s5, %s2971_s5 }
 0x1b3   :  { %p4065_p2 = scmp.ne.s32.totalorder %s2971_s5, %s4064_s6  ;;  %p4070_p4 = scmp.lt.s32.totalorder %s4064_s6, %s4064_s6 }
 0x1b4   :  { %1565 = vmatpush1.bf16.msra.mxu1 %v3790_v27  ;;  %1719 = vmatpush1.bf16.msra.mxu0 %v3791_v6  ;;  %v3869_v27 = vld [vmem:[#allocation3 + $0x28] sm:$0xff]   ;;  %v3870_v6 = vld [vmem:[#allocation3 + $0x60] sm:$0xff]  }
 0x1b5   :  { %1858 = vmatprep.subr.bf16.mxu1 %v3794_v16  ;;  %2012 = vmatprep.subr.bf16.mxu0 %v3797_v28  ;;  %v3871_v16 = vld [vmem:[#allocation3 + $0x20] sm:$0xff]   ;;  %v3872_v28 = vld [vmem:[#allocation3 + $0x58] sm:$0xff]   ;;  %p4071_p5 = por %p4070_p4, %p4069_p3 }
 0x1b7   :  { %1583 = vmatmul.mubr.bf16.vlgmr.msra.gmra.mxu1 %v1457_v29  ;;  %1737 = vmatmul.mubr.bf16.vlgmr.msra.gmra.mxu0 %v1610_v30  ;;  %v3875_v29 = vld [vmem:[#allocation3 + $0x10] sm:$0xff]   ;;  %v3876_v30 = vld [vmem:[#allocation3 + $0x48] sm:$0xff]   ;;  %p4072_p6 = pnand %p4071_p5, %p4065_p2 }
 0x1b8   :  { %1859 = vmatpush1.bf16.msra.mxu1 %v3792_v31  ;;  %2013 = vmatpush1.bf16.msra.mxu0 %v3795_v18  ;;  %v3877_v31 = vld [vmem:[#allocation3 + $0x8] sm:$0xff]   ;;  %v3878_v18 = vld [vmem:[#allocation3 + $0x40] sm:$0xff]  }
 0x1b9   :  { %1860 = vmatprep.subr.bf16.mxu1 %v3800_v36  ;;  %2014 = vmatprep.subr.bf16.mxu0 %v3803_v37  ;;  %v3879_v36 = vld [vmem:[#allocation3] sm:$0xff]   ;;  %v3880_v37 = vld [vmem:[#allocation3 + $0xf8] sm:$0xff]  }
 0x1ba   :  { %1890 = vmatprep.mubr.bf16.mxu1 %v4108_v32  ;;  %2044 = vmatprep.mubr.bf16.mxu0 %v4108_v32 }
 0x1bc   :  { %1861 = vmatpush1.bf16.msra.mxu1 %v3798_v38  ;;  %2015 = vmatpush1.bf16.msra.mxu0 %v3801_v39  ;;  %v3881_v38 = vld [vmem:[#allocation3 + $0xb8] sm:$0xff]   ;;  %v3882_v39 = vld [vmem:[#allocation3 + $0xf0] sm:$0xff]  }
 0x1bd   :  { %1862 = vmatprep.subr.bf16.mxu1 %v3806_v40  ;;  %2016 = vmatprep.subr.bf16.mxu0 %v3809_v8  ;;  %v3883_v40 = vld [vmem:[#allocation3 + $0xb0] sm:$0xff]   ;;  %v3884_v8 = vld [vmem:[#allocation3 + $0xe8] sm:$0xff]  }
 0x1c0   :  { %1863 = vmatpush1.bf16.msra.mxu1 %v3804_v11  ;;  %2017 = vmatpush1.bf16.msra.mxu0 %v3807_v41  ;;  %v3885_v11 = vld [vmem:[#allocation3 + $0xa8] sm:$0xff]   ;;  %v3886_v41 = vld [vmem:[#allocation3 + $0xe0] sm:$0xff]  }
 0x1c1   :  { %1864 = vmatprep.subr.bf16.mxu1 %v3812_v42  ;;  %2018 = vmatprep.subr.bf16.mxu0 %v3815_v43  ;;  %v3887_v42 = vld [vmem:[#allocation3 + $0xa0] sm:$0xff]   ;;  %v3888_v43 = vld [vmem:[#allocation3 + $0xd8] sm:$0xff]  }
 0x1c4   :  { %1865 = vmatpush1.bf16.msra.mxu1 %v3810_v44  ;;  %2019 = vmatpush1.bf16.msra.mxu0 %v3813_v45  ;;  %v3889_v44 = vld [vmem:[#allocation3 + $0x98] sm:$0xff]   ;;  %v3890_v45 = vld [vmem:[#allocation3 + $0xd0] sm:$0xff]  }
 0x1c5   :  { %1866 = vmatprep.subr.bf16.mxu1 %v3818_v46  ;;  %2020 = vmatprep.subr.bf16.mxu0 %v3821_v47  ;;  %v3891_v46 = vld [vmem:[#allocation3 + $0x90] sm:$0xff]   ;;  %v3892_v47 = vld [vmem:[#allocation3 + $0xc8] sm:$0xff]  }
 0x1c8   :  { %1867 = vmatpush1.bf16.msra.mxu1 %v3816_v48  ;;  %2021 = vmatpush1.bf16.msra.mxu0 %v3819_v49  ;;  %v3893_v48 = vld [vmem:[#allocation3 + $0x88] sm:$0xff]   ;;  %v3894_v49 = vld [vmem:[#allocation3 + $0xc0] sm:$0xff]  }
 0x1c9   :  { %1868 = vmatprep.subr.bf16.mxu1 %v3824_v50  ;;  %2022 = vmatprep.subr.bf16.mxu0 %v3827_v34  ;;  %v3895_v50 = vld [vmem:[#allocation3 + $0x80] sm:$0xff]   ;;  %v3896_v34 = vld [vmem:[#allocation3 + $0x178] sm:$0xff]  }
 0x1cc   :  { %1869 = vmatpush1.bf16.msra.mxu1 %v3822_v52  ;;  %2023 = vmatpush1.bf16.msra.mxu0 %v3825_v53  ;;  %v1458_v52 = vld [vmem:[#allocation5] ss:$8 sm:$0x3] }
 0x1cd   :  { %1870 = vmatprep.subr.bf16.mxu1 %v3830_v54  ;;  %2024 = vmatprep.subr.bf16.mxu0 %v3833_v55  ;;  %v1463_v53 = vrot.slane %v1458_v52, %v4201_v33  ;;  %v1467_v54 = vrot.slane %v1458_v52, %v4209_v35  ;;  %v3899_v52 = vld [vmem:[#allocation3 + $0x130] sm:$0xff]  }
 0x1d0   :  { %1871 = vmatpush1.bf16.msra.mxu1 %v3828_v56  ;;  %2025 = vmatpush1.bf16.msra.mxu0 %v3831_v57 }
 0x1d1   :  { %1872 = vmatprep.subr.bf16.mxu1 %v3836_v58  ;;  %2026 = vmatprep.subr.bf16.mxu0 %v3839_v59 }
 0x1d4   :  { %1873 = vmatpush1.bf16.msra.mxu1 %v3834_v60  ;;  %2027 = vmatpush1.bf16.msra.mxu0 %v3837_v61 }
 0x1d5   :  { %2176 = vmatprep.subr.bf16.mxu1 %v3842_v62  ;;  %3399 = vmatprep.subr.bf16.mxu0 %v3880_v37 }
 0x1d7   :  { %1891 = vmatmul.mubr.bf16.vlgmr.msra.gmra.mxu1 %v1764_v63  ;;  %2045 = vmatmul.mubr.bf16.vlgmr.msra.gmra.mxu0 %v1918_v0 }
 0x1d8   :  { %2177 = vmatpush1.bf16.msra.mxu1 %v3840_v1  ;;  %2208 = vmatprep.mubr.bf16.mxu1 %v4108_v32  ;;  %v3861_v32 = vld [vmem:[#allocation2 + $0x200] ss:$8 sps:$4 sm:$0xff]  }
 0x1d9   :  { %2178 = vmatprep.subr.bf16.mxu1 %v3845_v2  ;;  %3400 = vmatpush3.bf16.msra.mxu0 %v3881_v38 }
 0x1da   :  { %3401 = vmatprep.subr.bf16.mxu0 %v3882_v39 }
 0x1dc   :  { %2179 = vmatpush1.bf16.msra.mxu1 %v3843_v3 }
 0x1dd   :  { %2180 = vmatprep.subr.bf16.mxu1 %v3848_v4  ;;  %3402 = vmatpush3.bf16.msra.mxu0 %v3883_v40 }
 0x1de   :  { %3403 = vmatprep.subr.bf16.mxu0 %v3884_v8 }
 0x1e0   :  { %2181 = vmatpush1.bf16.msra.mxu1 %v3846_v17  ;;  %v1920_v17 = vld [vmem:[#allocation5 + $0x3] ss:$8 sm:$0x3] }
 0x1e1   :  { %2182 = vmatprep.subr.bf16.mxu1 %v3851_v5  ;;  %3404 = vmatpush3.bf16.msra.mxu0 %v3885_v11  ;;  %v1925_v5 = vrot.slane %v1920_v17, %v4201_v33 }
 0x1e2   :  { %3405 = vmatprep.subr.bf16.mxu0 %v3886_v41 }
 0x1e4   :  { %2183 = vmatpush1.bf16.msra.mxu1 %v3849_v12  ;;  %v1929_v12 = vrot.slane %v1920_v17, %v4209_v35 }
 0x1e5   :  { %2184 = vmatprep.subr.bf16.mxu1 %v3854_v21  ;;  %3406 = vmatpush3.bf16.msra.mxu0 %v3887_v42 }
 0x1e6   :  { %3407 = vmatprep.subr.bf16.mxu0 %v3888_v43 }
 0x1e8   :  { %2185 = vmatpush1.bf16.msra.mxu1 %v3852_v15 }
 0x1e9   :  { %2186 = vmatprep.subr.bf16.mxu1 %v3857_v51  ;;  %3408 = vmatpush3.bf16.msra.mxu0 %v3889_v44 }
 0x1ea   :  { %3409 = vmatprep.subr.bf16.mxu0 %v3890_v45 }
 0x1ec   :  { %2187 = vmatpush1.bf16.msra.mxu1 %v3855_v7 }
 0x1ed   :  { %2188 = vmatprep.subr.bf16.mxu1 %v3860_v9  ;;  %3410 = vmatpush3.bf16.msra.mxu0 %v3891_v46 }
 0x1ee   :  { %3411 = vmatprep.subr.bf16.mxu0 %v3892_v47 }
 0x1f0   :  { %2189 = vmatpush1.bf16.msra.mxu1 %v3858_v10 }
 0x1f1   :  { %2190 = vmatprep.subr.bf16.mxu1 %v3863_v13  ;;  %3412 = vmatpush3.bf16.msra.mxu0 %v3893_v48 }
 0x1f2   :  { %3413 = vmatprep.subr.bf16.mxu0 %v3894_v49  ;;  %v3897_v49 = vld [vmem:[#allocation3 + $0x138] sm:$0xff]  }
 0x1f4   :  { %2191 = vmatpush1.bf16.msra.mxu1 %v3861_v32 }
 0x1f5   :  { %3421 = vmatprep.subr.bf16.mxu1 %v3864_v14  ;;  %3414 = vmatpush3.bf16.msra.mxu0 %v3895_v50 }
 0x1f6   :  { %3443 = vmatprep.subr.bf16.mxu0 %v3896_v34  ;;  %v3898_v34 = vld [vmem:[#allocation3 + $0x170] sm:$0xff]  }
 0x1f7   :  { %2209 = vmatmul.mubr.bf16.vlgmr.msra.gmra.mxu1 %v2082_v20 }
 0x1f8   :  { %3422 = vmatpush3.bf16.msra.mxu1 %v3865_v19 }
 0x1f9   :  { %3423 = vmatprep.subr.bf16.mxu1 %v3866_v23 }
 0x1fc   :  { %3424 = vmatpush3.bf16.msra.mxu1 %v3867_v24 }
 0x1fd   :  { %3425 = vmatprep.subr.bf16.mxu1 %v3868_v26 }
 0x200   :  { %3426 = vmatpush3.bf16.msra.mxu1 %v3869_v27 }
 0x201   :  { %3427 = vmatprep.subr.bf16.mxu1 %v3870_v6 }
 0x204   :  { %3428 = vmatpush3.bf16.msra.mxu1 %v3871_v16  ;;  %v1612_v16 = vld [vmem:[#allocation5 + $0x1] ss:$8 sm:$0x3] }
 0x205   :  { %3429 = vmatprep.subr.bf16.mxu1 %v3872_v28  ;;  %v1617_v28 = vrot.slane %v1612_v16, %v4201_v33 }
 0x208   :  { %3430 = vmatpush3.bf16.msra.mxu1 %v3873_v22  ;;  %v2084_v22 = vld [vmem:[#allocation5 + $0x4] ss:$8 sm:$0x3] }
 0x209   :  { %3431 = vmatprep.subr.bf16.mxu1 %v3874_v25  ;;  %v1621_v25 = vrot.slane %v1612_v16, %v4209_v35  ;;  %v3919_v16 = vld [vmem:[#allocation4] sm:$0xff]  }
 0x20c   :  { %3432 = vmatpush3.bf16.msra.mxu1 %v3875_v29  ;;  %v2089_v29 = vrot.slane %v2084_v22, %v4201_v33 }
 0x20d   :  { %3433 = vmatprep.subr.bf16.mxu1 %v3876_v30 }
 0x210   :  { %3434 = vmatpush3.bf16.msra.mxu1 %v3877_v31 }
 0x211   :  { %3435 = vmatprep.subr.bf16.mxu1 %v3878_v18  ;;  %v2093_v18 = vrot.slane %v2084_v22, %v4209_v35  ;;  %v3921_v22 = vld [vmem:[#allocation4 + $0x70] sm:$0xff]  }
 0x214   :  { %3436 = vmatpush3.bf16.msra.mxu1 %v3879_v36 }
 0x277   :  { %v1584_v55 = vpop.f32.mrf.mxu1  ;;  %v1738_v56 = vpop.f32.mrf.mxu0 }
 0x278   :  { %v1585_v57 = vadd.f32 %v1584_v55, %v1463_v53  ;;  %v1739_v30 = vadd.f32 %v1738_v56, %v1617_v28  ;;  %v3900_v53 = vld [vmem:[#allocation3 + $0x168] sm:$0xff]   ;;  %v3902_v55 = vld [vmem:[#allocation3 + $0x160] sm:$0xff]   ;;  %v3920_v28 = vld [vmem:[#allocation4 + $0x78] sm:$0xff]  }
 0x279   :  { %v1586_v58 = vpop.f32.mrf.mxu1  ;;  %v1740_v59 = vpop.f32.mrf.mxu0 }
 0x27a   :  { %v1587_v60 = vadd.f32 %v1586_v58, %v1467_v54  ;;  %v1591_v61 = vmax.f32 %v1585_v57, 0.0  ;;  %v1741_v31 = vadd.f32 %v1740_v59, %v1621_v25  ;;  %v1745_v39 = vmax.f32 %v1739_v30, 0.0  ;;  %v3901_v54 = vld [vmem:[#allocation3 + $0x128] sm:$0xff]   ;;  %v3903_v58 = vld [vmem:[#allocation3 + $0x120] sm:$0xff]   ;;  %v3924_v30 = vld [vmem:[#allocation4 + $0x58] sm:$0xff]  }
 0x27b   :  { %v1588_v62 = vpop.f32.mrf.mxu1  ;;  %v1742_v63 = vpop.f32.mrf.mxu0  ;;  %v3922_v25 = vld [vmem:[#allocation4 + $0x68] sm:$0xff]  }
 0x27c   :  { %v1592_v0 = vmax.f32 %v1587_v60, 0.0  ;;  %v2265_v4 = vpack.c.bf16 %v1591_v61, %v1591_v61  ;;  %v1746_v8 = vmax.f32 %v1741_v31, 0.0  ;;  %v3904_v60 = vld [vmem:[#allocation3 + $0x158] sm:$0xff]   ;;  %v1766_v62 = vld [vmem:[#allocation5 + $0x2] ss:$8 sm:$0x3] }
 0x27d   :  { %v1589_v1 = vpop.f32.mrf.mxu1  ;;  %v1743_v2 = vpop.f32.mrf.mxu0  ;;  %v3905_v63 = vld [vmem:[#allocation3 + $0x118] sm:$0xff]   ;;  %v3925_v31 = vld [vmem:[#allocation4 + $0x50] sm:$0xff]  }
 0x27e   :  { %v2266_v3 = vpack.c.bf16 %v1592_v0, %v1592_v0  ;;  %v3906_v0 = vld [vmem:[#allocation3 + $0x150] sm:$0xff]   ;;  %v1771_v1 = vrot.slane %v1766_v62, %v4201_v33  ;;  %v1775_v2 = vrot.slane %v1766_v62, %v4209_v35 }
 0x280   :  { %2566 = vmatprep.mubr.bf16.mxu1 %v2266_v3  ;;  %v3907_v3 = vld [vmem:[#allocation3 + $0x110] sm:$0xff]  }
 0x281   :  { %2567 = vmatmul.mubr.bf16.vlgmr.msra.gmra.mxu1 %v2265_v4  ;;  %v3908_v4 = vld [vmem:[#allocation3 + $0x148] sm:$0xff]  }
 0x297   :  { %v4256_v21 = vpop.f32.mrf.mxu1  ;;  %v2046_v15 = vpop.f32.mrf.mxu0 }
 0x298   :  { %v2047_v51 = vadd.f32 %v2046_v15, %v1925_v5  ;;  %v1893_v17 = vadd.f32 %v4256_v21, %v1771_v1  ;;  %v3910_v15 = vld [vmem:[#allocation3 + $0x140] sm:$0xff]   ;;  %v3912_v21 = vld [vmem:[#allocation4 + $0x38] sm:$0xff]  }
 0x299   :  { %v4258_v7 = vpop.f32.mrf.mxu1  ;;  %v2048_v9 = vpop.f32.mrf.mxu0 }
 0x29a   :  { %v3227_v10 = vmul.f32 -1.442695, %v2047_v51  ;;  %v2049_v13 = vadd.f32 %v2048_v9, %v1929_v12  ;;  %v1895_v5 = vadd.f32 %v4258_v7, %v1775_v2  ;;  %v3909_v12 = vld [vmem:[#allocation3 + $0x108] sm:$0xff]   ;;  %v1899_v9 = vmax.f32 %v1893_v17, 0.0 }
 0x29b   :  { %v1896_v32 = vpop.f32.mrf.mxu1  ;;  %v2050_v14 = vpop.f32.mrf.mxu0  ;;  %v4109_v7 = vmov 0.0  }
 0x29c   :  { %3928 = vpow2.f32 %v3227_v10  ;;  %v3228_v19 = vmul.f32 -1.442695, %v2049_v13  ;;  %v1900_v10 = vmax.f32 %v1895_v5, 0.0  ;;  %v3911_v13 = vld [vmem:[#allocation3 + $0x100] sm:$0xff]   ;;  %3483 = vmatprep.subr.bf16.mxu1 %v4109_v7  ;;  %3499 = vmatprep.mubr.msk.bf16.mxu1 %vm4110_vm0, %v4109_v7 }
 0x29d   :  { %v1897_v20 = vpop.f32.mrf.mxu1  ;;  %v2051_v23 = vpop.f32.mrf.mxu0  ;;  %3484 = vmatpush3.bf16.msra.mxu1 %v3912_v21 }
 0x29e   :  { %3930 = vpow2.f32 %v3228_v19  ;;  %v3913_v20 = vld [vmem:[#allocation4 + $0x30] sm:$0xff]   ;;  %3485 = vmatprep.subr.bf16.mxu1 %v4109_v7  ;;  %v3914_v23 = vld [vmem:[#allocation4 + $0x28] sm:$0xff]  }
 0x2a1   :  { %3486 = vmatpush3.bf16.msra.mxu1 %v3913_v20 }
 0x2a2   :  { %3487 = vmatprep.subr.bf16.mxu1 %v4109_v7 }
 0x2a5   :  { %3488 = vmatpush3.bf16.msra.mxu1 %v3914_v23 }
 0x2a6   :  { %3489 = vmatprep.subr.bf16.mxu1 %v4109_v7 }
 0x2a9   :  { %v3929_v24 = vpop.eup %3928 }
 0x2aa   :  { %v2059_v26 = vadd.f32 1.0, %v3929_v24  ;;  %v3915_v24 = vld [vmem:[#allocation4 + $0x20] sm:$0xff]  }
 0x2ab   :  { %v3931_v27 = vpop.eup %3930  ;;  %3490 = vmatpush3.bf16.msra.mxu1 %v3915_v24 }
 0x2ac   :  { %3932 = vrcp.f32 %v2059_v26  ;;  %v2060_v6 = vadd.f32 1.0, %v3931_v27  ;;  %v3916_v26 = vld [vmem:[#allocation4 + $0x18] sm:$0xff]   ;;  %3491 = vmatprep.subr.bf16.mxu1 %v4109_v7  ;;  %v3917_v27 = vld [vmem:[#allocation4 + $0x10] sm:$0xff]  }
 0x2ae   :  { %3934 = vrcp.f32 %v2060_v6  ;;  %v3918_v6 = vld [vmem:[#allocation4 + $0x8] sm:$0xff]  }
 0x2af   :  { %3492 = vmatpush3.bf16.msra.mxu1 %v3916_v26 }
 0x2b0   :  { %3493 = vmatprep.subr.bf16.mxu1 %v4109_v7 }
 0x2b3   :  { %3494 = vmatpush3.bf16.msra.mxu1 %v3917_v27 }
 0x2b4   :  { %3495 = vmatprep.subr.bf16.mxu1 %v4109_v7 }
 0x2b7   :  { %v2210_v36 = vpop.f32.mrf.mxu1  ;;  %3496 = vmatpush3.bf16.msra.mxu1 %v3918_v6 }
 0x2b8   :  { %v2211_v37 = vadd.f32 %v2210_v36, %v2089_v29  ;;  %3497 = vmatprep.subr.bf16.mxu1 %v4109_v7  ;;  %v3923_v29 = vld [vmem:[#allocation4 + $0x60] sm:$0xff]  }
 0x2b9   :  { %v3933_v38 = vpop.eup %3932  ;;  %v2212_v40 = vpop.f32.mrf.mxu1 }
 0x2ba   :  { %v3245_v11 = vmul.f32 -1.442695, %v2211_v37  ;;  %v2213_v41 = vadd.f32 %v2212_v40, %v2093_v18  ;;  %v2229_v44 = vmul.f32 %v3933_v38, %v1745_v39 }
 0x2bb   :  { %v3935_v42 = vpop.eup %3934  ;;  %v2214_v43 = vpop.f32.mrf.mxu1  ;;  %3498 = vmatpush3.bf16.msra.mxu1 %v3919_v16 }
 0x2bc   :  { %3936 = vpow2.f32 %v3245_v11  ;;  %v3246_v45 = vmul.f32 -1.442695, %v2213_v41  ;;  %v2230_v46 = vmul.f32 %v3935_v42, %v1746_v8  ;;  %v2300_v50 = vpack.c.bf16 %v2229_v44, %v2229_v44 }
 0x2bd   :  { %v2215_v47 = vpop.f32.mrf.mxu1 }
 0x2be   :  { %3938 = vpow2.f32 %v3246_v45  ;;  %v2301_v48 = vpack.c.bf16 %v2230_v46, %v2230_v46  ;;  %v2746_v47 = vld [vmem:[#allocation5 + $0x5] ss:$0 sm:$0xff] }
 0x2c0   :  { %2430 = vmatprep.mubr.bf16.mxu0 %v2301_v48 }
 0x2c1   :  { %2431 = vmatmul.mubr.bf16.vlgmr.msra.gmra.mxu0 %v2300_v50 }
 0x2c2   :  { %3444 = vmatpush3.bf16.msra.mxu0 %v3897_v49 }
 0x2c3   :  { %3445 = vmatprep.subr.bf16.mxu0 %v3898_v34 }
 0x2c6   :  { %3446 = vmatpush3.bf16.msra.mxu0 %v3899_v52 }
 0x2c7   :  { %3447 = vmatprep.subr.bf16.mxu0 %v3900_v53 }
 0x2c9   :  { %v3937_v56 = vpop.eup %3936 }
 0x2ca   :  { %v2223_v57 = vadd.f32 1.0, %v3937_v56  ;;  %3448 = vmatpush3.bf16.msra.mxu0 %v3901_v54  ;;  %v3926_v54 = vld [vmem:[#allocation4 + $0x48] sm:$0xff]   ;;  %v2766_v56 = vld [vmem:[#allocation5 + $0x6] ss:$0 sm:$0xff] }
 0x2cb   :  { %v3939_v59 = vpop.eup %3938  ;;  %3449 = vmatprep.subr.bf16.mxu0 %v3902_v55  ;;  %v3927_v55 = vld [vmem:[#allocation4 + $0x40] sm:$0xff]  }
 0x2cc   :  { %3940 = vrcp.f32 %v2223_v57  ;;  %v2224_v61 = vadd.f32 1.0, %v3939_v59 }
 0x2ce   :  { %3942 = vrcp.f32 %v2224_v61  ;;  %3450 = vmatpush3.bf16.msra.mxu0 %v3903_v58 }
 0x2cf   :  { %3451 = vmatprep.subr.bf16.mxu0 %v3904_v60 }
 0x2d2   :  { %3452 = vmatpush3.bf16.msra.mxu0 %v3905_v63 }
 0x2d3   :  { %3453 = vmatprep.subr.bf16.mxu0 %v3906_v0  ;;  %v2874_v0 = vld [vmem:[#allocation5 + $0x7] ss:$0 sm:$0xff] }
 0x2d6   :  { %3454 = vmatpush3.bf16.msra.mxu0 %v3907_v3 }
 0x2d7   :  { %3455 = vmatprep.subr.bf16.mxu0 %v3908_v4 }
 0x2d9   :  { %v3941_v51 = vpop.eup %3940 }
 0x2da   :  { %3456 = vmatpush3.bf16.msra.mxu0 %v3909_v12  ;;  %v2231_v35 = vmul.f32 %v3941_v51, %v1899_v9 }
 0x2db   :  { %v3943_v33 = vpop.eup %3942  ;;  %3457 = vmatprep.subr.bf16.mxu0 %v3910_v15 }
 0x2dc   :  { %v2232_v32 = vmul.f32 %v3943_v33, %v1900_v10  ;;  %v2607_v19 = vpack.c.bf16 %v2231_v35, %v2231_v35 }
 0x2de   :  { %3458 = vmatpush3.bf16.msra.mxu0 %v3911_v13  ;;  %v2608_v14 = vpack.c.bf16 %v2232_v32, %v2232_v32 }
 0x2df   :  { %3503 = vmatprep.subr.bf16.mxu0 %v4109_v7 }
 0x2e0   :  { %2737 = vmatprep.mubr.bf16.mxu0 %v2608_v14 }
 0x2e1   :  { %2738 = vmatmul.mubr.bf16.vlgmr.msra.gmra.mxu0 %v2607_v19 }
 0x2e2   :  { %3519 = vmatprep.mubr.msk.bf16.mxu0 %vm4110_vm0, %v4109_v7  ;;  %3504 = vmatpush3.bf16.msra.mxu0 %v3920_v28 }
 0x2e3   :  { %3505 = vmatprep.subr.bf16.mxu0 %v4109_v7 }
 0x2e6   :  { %3506 = vmatpush3.bf16.msra.mxu0 %v3921_v22 }
 0x2e7   :  { %3507 = vmatprep.subr.bf16.mxu0 %v4109_v7 }
 0x2ea   :  { %3508 = vmatpush3.bf16.msra.mxu0 %v3922_v25 }
 0x2eb   :  { %3509 = vmatprep.subr.bf16.mxu0 %v4109_v7 }
 0x2ee   :  { %3510 = vmatpush3.bf16.msra.mxu0 %v3923_v29 }
 0x2ef   :  { %3511 = vmatprep.subr.bf16.mxu0 %v4109_v7 }
 0x2f2   :  { %3512 = vmatpush3.bf16.msra.mxu0 %v3924_v30 }
 0x2f3   :  { %3513 = vmatprep.subr.bf16.mxu0 %v4109_v7 }
 0x2f6   :  { %3514 = vmatpush3.bf16.msra.mxu0 %v3925_v31 }
 0x2f7   :  { %3515 = vmatprep.subr.bf16.mxu0 %v4109_v7 }
 0x2fa   :  { %3516 = vmatpush3.bf16.msra.mxu0 %v3926_v54 }
 0x2fb   :  { %3517 = vmatprep.subr.bf16.mxu0 %v4109_v7 }
 0x2fe   :  { %3518 = vmatpush3.bf16.msra.mxu0 %v3927_v55 }
 0x341   :  { %v3437_v18 = vpop.f32.mrf.mxu1 }
 0x343   :  { %v3438_v36 = vpop.f32.mrf.mxu1 }
 0x344   :  { %v3439_v37 = vadd.f32 %v3438_v36, %v3437_v18 }
 0x345   :  { %v3440_v38 = vpop.f32.mrf.mxu1 }
 0x347   :  { %v3441_v39 = vpop.f32.mrf.mxu1 }
 0x381   :  { %v3415_v40 = vpop.f32.mrf.mxu0 }
 0x383   :  { %v3416_v8 = vpop.f32.mrf.mxu0 }
 0x384   :  { %v3417_v42 = vadd.f32 %v3416_v8, %v3415_v40 }
 0x385   :  { %v3418_v11 = vpop.f32.mrf.mxu0 }
 0x386   :  { %v2569_v45 = vadd.f32 %v3439_v37, %v3417_v42 }
 0x387   :  { %v3419_v41 = vpop.f32.mrf.mxu0 }
 0x3a1   :  { %v3459_v43 = vpop.f32.mrf.mxu0 }
 0x3a3   :  { %v3460_v44 = vpop.f32.mrf.mxu0 }
 0x3a4   :  { %v3461_v46 = vadd.f32 %v3460_v44, %v3459_v43 }
 0x3a5   :  { %v3462_v48 = vpop.f32.mrf.mxu0 }
 0x3a6   :  { %v2745_v49 = vadd.f32 %v3461_v46, %v2569_v45 }
 0x3a7   :  { %v3463_v50 = vpop.f32.mrf.mxu0 }
 0x3a8   :  { %v2747_v34 = vadd.f32 %v2746_v47, %v2745_v49 }
 0x3aa   :  { %v2748_v52 = vmax.f32 %v2747_v34, 0.0 }
 0x3ac   :  { %v2765_v53 = vpack.c.bf16 %v2748_v52, %v2748_v52 }
 0x3ae   :  { %3500 = vmatmul.mubr.bf16.vlgmr.msra.gmra.mxu1 %v2765_v53 }
 0x46e   :  { %v2849_v57 = vpop.f32.mrf.mxu1 }
 0x46f   :  { %v2850_v58 = vadd.f32 %v2849_v57, %v2766_v56 }
 0x470   :  { %v3501_v59 = vpop.f32.mrf.mxu1 }
 0x471   :  { %v2855_v60 = vmax.f32 %v2850_v58, 0.0 }
 0x472   :  { %v2852_v61 = vpop.f32.mrf.mxu1 }
 0x473   :  { %v2873_v62 = vpack.c.bf16 %v2855_v60, %v2855_v60 }
 0x474   :  { %v3502_v63 = vpop.f32.mrf.mxu1 }
 0x475   :  { %3520 = vmatmul.mubr.bf16.vlgmr.msra.gmra.mxu0 %v2873_v62 }
 0x535   :  { %v2957_v1 = vpop.f32.mrf.mxu0 }
 0x536   :  { %v2958_v2 = vadd.f32 %v2957_v1, %v2874_v0 }
 0x537   :  { %v3521_v3 = vpop.f32.mrf.mxu0 }
 0x538   :  { %2963 = vst [vmem:[#allocation12] sm:$0xff] %v2958_v2 }
 0x539   :  { %v2960_v4 = vpop.f32.mrf.mxu0 }
 0x53a   :  { %4075 = shalt.err (!%p4072_p6)
}
 0x53b   :  { %2973 = dma.vmem_to_hbm [thread:$0]  %s2971_s5, 128, %s4296_s7, [#allocation9]   ;;  %v3522_v17 = vpop.f32.mrf.mxu0 }
 0x53c   :  { %4096 = dma.done.wait [#allocation9], 128  }
 0x53d   :  { %4097 = vsyncadd [#allocation9], 4294967168 }
 0x53e   :  { %2977 = vsyncpa [#allocation8], 1 }
 0x53f   :  { %2978 = vsyncpa [#allocation11], 1 }
 0x540   :  { %2979 = vsyncpa [#allocation9], 1 }
 0x541   :  { %2980 = vsyncmov [#allocation6] }
 0x544   :  { %s2981_s12 = vpop.sfrf %2980 }
 0x545   :  { %p3311_p7 = scmp.ne.s32.totalorder %s2981_s12, 0 }
 0x547   :  { %2985 = shalt.err (%p3311_p7)  }
 0x548   :  { %2987 = vsyncmov [#allocation6 + $0x1] }
 0x54b   :  { %s2988_s13 = vpop.sfrf %2987 }
 0x54c   :  { %p3312_p8 = scmp.ne.s32.totalorder %s2988_s13, 0 }
 0x54e   :  { %2992 = shalt.err (%p3312_p8)  }
 0x54f   :  { %2994 = vsyncmov [#allocation6 + $0x2] }
 0x552   :  { %s2995_s14 = vpop.sfrf %2994 }
 0x553   :  { %p3313_p9 = scmp.ne.s32.totalorder %s2995_s14, 0 }
 0x555   :  { %2999 = shalt.err (%p3313_p9)  }
 0x556   :  { %3001 = vsyncmov [#allocation6 + $0x3] }
 0x559   :  { %s3002_s7 = vpop.sfrf %3001 }
 0x55a   :  { %p3314_p10 = scmp.ne.s32.totalorder %s3002_s7, 0 }
 0x55c   :  { %3006 = shalt.err (%p3314_p10)  }

</bundles_post_ra>
